<compile_context>
chip_gen: v5e
topology: v5e:2x2
jax: 0.10.0
libtpu: 0.0.40
codegen_flags: <defaults>
</compile_context>

<pallas_src>
import math
from functools import partial

import jax
import jax.numpy as jnp
from jax.experimental import pallas as pl
from jax.experimental.pallas import tpu as pltpu

LEAKY_SLOPE = 0.2
BN_EPS = 1e-5


# ---------------------------------------------------------------------------
# Kernel 1: projection layer = ConvTranspose2d(k=4, s=1, p=0) on a 1x1 input.
#   out[n, co*16 + kh*4 + kw] = sum_ci z[n, ci] * W[ci, co, kh, kw] + b[co]
# Output lane width = Cout*K*K (lane-dense), bf16 dot, f32 accumulate+bias.
# ---------------------------------------------------------------------------
def _dense_kernel(z_ref, w_ref, b_ref, o_ref):
    o_ref[...] = (
        jnp.dot(z_ref[...], w_ref[...], preferred_element_type=jnp.float32)
        + b_ref[...]
    )


def dense_project(z, w, b):
    """z: (N, Cin) bf16, w: (Cin, Cout*16) bf16, b: (1, Cout*16) f32."""
    n, cin = z.shape
    cokk = w.shape[1]
    tm = n if n <= 128 else 128
    return pl.pallas_call(
        _dense_kernel,
        out_shape=jax.ShapeDtypeStruct((n, cokk), jnp.float32),
        grid=(pl.cdiv(n, tm),),
        in_specs=[
            pl.BlockSpec((tm, cin), lambda i: (i, 0)),
            pl.BlockSpec((cin, cokk), lambda i: (0, 0)),
            pl.BlockSpec((1, cokk), lambda i: (0, 0)),
        ],
        out_specs=pl.BlockSpec((tm, cokk), lambda i: (i, 0)),
        compiler_params=pltpu.CompilerParams(dimension_semantics=("parallel",)),
    )(z, w, b)


# ---------------------------------------------------------------------------
# Kernel 2: ConvTranspose2d(k=4, s=2, p=1) via parity (sub-pixel) decomposition.
# For output pixel (2m+ry, 2u+rx):
#   out = b[co] + sum_{ci, a, b in {0,1}} W[ci, co, 3-ry-2a, 3-rx-2b]
#                                        * x_pad[ci, m+ry+a, u+rx+b]
# The padded input is flattened per image to (Cin, Lp); a tap shift is then a
# static lane offset, so the 16 taps are 16 small bf16 MXU dots accumulated in
# f32 inside the kernel.  Output is parity-packed (4, Cout, H*Wp) per image and
# interleaved (depth-to-space) in cheap XLA glue afterwards.
# ---------------------------------------------------------------------------
def _convt_s2_kernel(x_ref, w_ref, b_ref, o_ref, *, wp, out_len, final_tanh):
    # x_ref: (1, Cin, Lp) bf16 | w_ref: (4, 4, Cout, Cin) bf16
    # b_ref: (Cout, 1) f32     | o_ref: (1, 4, Cout, out_len) f32
    x = x_ref[0, :, :]
    cout = o_ref.shape[2]
    for p in range(4):                      # parity (ry, rx) - fully unrolled
        ry, rx = p // 2, p % 2
        acc = jnp.zeros((cout, out_len), jnp.float32)
        for t in range(4):                  # 2x2 taps of this parity
            a, bb = t // 2, t % 2
            off = (ry + a) * wp + (rx + bb)
            acc = acc + jnp.dot(
                w_ref[p, t, :, :],
                x[:, off:off + out_len],
                preferred_element_type=jnp.float32,
            )
        acc = acc + b_ref[...]
        if final_tanh:                      # fused epilogue (EUP, free slot)
            acc = jnp.tanh(acc)
        o_ref[0, p, :, :] = acc


def conv_transpose_s2(act, w, b, *, final_tanh):
    """act: (N, Cin, H, W) f32, w: (Cin, Cout, 4, 4), b: (Cout,) ->
    (N, Cout, 2H, 2W) f32 (== PyTorch ConvTranspose2d(k=4, s=2, p=1))."""
    n, cin, h, wdt = act.shape
    cout = w.shape[1]
    wp = wdt + 2                       # padded row pitch
    lp = (h + 3) * wp                  # pad top=1, bottom=2, left=1, right=1
    out_len = h * wp                   # per-parity output length (padded pitch)

    xp = jnp.pad(act, ((0, 0), (0, 0), (1, 2), (1, 1)))
    xf = xp.reshape(n, cin, lp).astype(jnp.bfloat16)

    # parity/tap packed weights: wq[2*ry+rx, 2*a+b] = W[:, :, 3-ry-2a, 3-rx-2b].T
    parities = []
    for ry in (0, 1):
        for rx in (0, 1):
            taps = []
            for a in (0, 1):
                for bb in (0, 1):
                    taps.append(w[:, :, 3 - ry - 2 * a, 3 - rx - 2 * bb].T)
            parities.append(jnp.stack(taps))
    wq = jnp.stack(parities).astype(jnp.bfloat16)          # (4, 4, Cout, Cin)
    bq = b.reshape(cout, 1).astype(jnp.float32)

    of = pl.pallas_call(
        partial(_convt_s2_kernel, wp=wp, out_len=out_len, final_tanh=final_tanh),
        out_shape=jax.ShapeDtypeStruct((n, 4, cout, out_len), jnp.float32),
        grid=(n,),
        in_specs=[
            pl.BlockSpec((1, cin, lp), lambda i: (i, 0, 0)),
            pl.BlockSpec((4, 4, cout, cin), lambda i: (0, 0, 0, 0)),
            pl.BlockSpec((cout, 1), lambda i: (0, 0)),
        ],
        out_specs=pl.BlockSpec((1, 4, cout, out_len), lambda i: (i, 0, 0, 0)),
        compiler_params=pltpu.CompilerParams(dimension_semantics=("parallel",)),
    )(xf, wq, bq)

    # depth-to-space: crop padded pitch and interleave the 4 parities.
    of = of.reshape(n, 2, 2, cout, h, wp)[..., :wdt]       # (N, ry, rx, C, H, W)
    out = of.transpose(0, 3, 4, 1, 5, 2).reshape(n, cout, 2 * h, 2 * wdt)
    return out


# ---------------------------------------------------------------------------
# Kernels 3+4: training-mode BatchNorm2d + LeakyReLU(0.2), two-pass and tiled.
# Pass 1 accumulates per-channel sum / sum-of-squares over the N grid axis
# (exact full-batch statistics); pass 2 normalizes tile-by-tile ("parallel").
# ---------------------------------------------------------------------------
def _bn_stats_kernel(x_ref, s_ref, ss_ref):
    @pl.when(pl.program_id(0) == 0)
    def _():
        s_ref[...] = jnp.zeros_like(s_ref)
        ss_ref[...] = jnp.zeros_like(ss_ref)

    x = x_ref[0, :, :]
    s_ref[...] += jnp.sum(x, axis=1, keepdims=True)
    ss_ref[...] += jnp.sum(x * x, axis=1, keepdims=True)


def _bn_leaky_kernel(x_ref, s_ref, ss_ref, g_ref, b_ref, o_ref, *, count):
    x = x_ref[0, :, :]
    inv = 1.0 / count
    mean = s_ref[...] * inv
    var = ss_ref[...] * inv - mean * mean          # biased variance (PyTorch BN)
    y = (x - mean) * jax.lax.rsqrt(var + BN_EPS) * g_ref[...] + b_ref[...]
    o_ref[0, :, :] = jnp.where(y >= 0.0, y, LEAKY_SLOPE * y)


def batchnorm_leaky(act, gamma, beta):
    """act: (N, C, H, W) f32 -> BN(train-mode batch stats) + LeakyReLU(0.2)."""
    n, c, h, w = act.shape
    hw = h * w
    x = act.reshape(n, c, hw)
    g = gamma.reshape(c, 1).astype(jnp.float32)
    bt = beta.reshape(c, 1).astype(jnp.float32)

    s, ss = pl.pallas_call(
        _bn_stats_kernel,
        out_shape=(jax.ShapeDtypeStruct((c, 1), jnp.float32),
                   jax.ShapeDtypeStruct((c, 1), jnp.float32)),
        grid=(n,),
        in_specs=[pl.BlockSpec((1, c, hw), lambda i: (i, 0, 0))],
        out_specs=(pl.BlockSpec((c, 1), lambda i: (0, 0)),
                   pl.BlockSpec((c, 1), lambda i: (0, 0))),
        compiler_params=pltpu.CompilerParams(dimension_semantics=("arbitrary",)),
    )(x)

    y = pl.pallas_call(
        partial(_bn_leaky_kernel, count=float(n * hw)),
        out_shape=jax.ShapeDtypeStruct((n, c, hw), jnp.float32),
        grid=(n,),
        in_specs=[
            pl.BlockSpec((1, c, hw), lambda i: (i, 0, 0)),
            pl.BlockSpec((c, 1), lambda i: (0, 0)),
            pl.BlockSpec((c, 1), lambda i: (0, 0)),
            pl.BlockSpec((c, 1), lambda i: (0, 0)),
            pl.BlockSpec((c, 1), lambda i: (0, 0)),
        ],
        out_specs=pl.BlockSpec((1, c, hw), lambda i: (i, 0, 0)),
        compiler_params=pltpu.CompilerParams(dimension_semantics=("parallel",)),
    )(x, s, ss, g, bt)
    return y.reshape(n, c, h, w)


# ---------------------------------------------------------------------------
# Generator: static layer config (Python ints) is kept OUT of the jitted
# pytree; params hold only arrays.
# ---------------------------------------------------------------------------
def make_layer_config(image_size, latent_dim, feat_map_size, num_channels):
    n_blocks = int(math.log2(image_size)) - 3
    cfg = [dict(cin=latent_dim, cout=feat_map_size * 2 ** n_blocks)]
    for nb in range(n_blocks, 0, -1):
        cfg.append(dict(cin=feat_map_size * 2 ** nb,
                        cout=feat_map_size * 2 ** (nb - 1)))
    cfg.append(dict(cin=feat_map_size, cout=num_channels))
    return cfg


def init_generator_params(key, cfg):
    params = []
    for layer in cfg:
        key, kw, kb = jax.random.split(key, 3)
        wgt = jax.random.normal(kw, (layer["cin"], layer["cout"], 4, 4),
                                jnp.float32) * 0.05
        bias = jax.random.normal(kb, (layer["cout"],), jnp.float32) * 0.05
        params.append(dict(w=wgt, b=bias,
                           gamma=jnp.ones((layer["cout"],), jnp.float32),
                           beta=jnp.zeros((layer["cout"],), jnp.float32)))
    return params


def make_generator_forward(image_size, latent_dim, feat_map_size, num_channels):
    cfg = make_layer_config(image_size, latent_dim, feat_map_size, num_channels)

    def forward(latents, params):
        n = latents.shape[0]

        # block_0: 1x1 -> 4x4 projection (lane-dense matmul) + BN + LeakyReLU
        p0 = params[0]
        cin0, cout0 = cfg[0]["cin"], cfg[0]["cout"]
        z = latents.reshape(n, cin0).astype(jnp.bfloat16)
        w0 = p0["w"].reshape(cin0, cout0 * 16).astype(jnp.bfloat16)
        b0 = jnp.repeat(p0["b"], 16).reshape(1, cout0 * 16).astype(jnp.float32)
        act = dense_project(z, w0, b0).reshape(n, cout0, 4, 4)
        act = batchnorm_leaky(act, p0["gamma"], p0["beta"])

        # stride-2 upsampling blocks; last one fuses Tanh, no BN
        for li in range(1, len(cfg)):
            p = params[li]
            is_last = li == len(cfg) - 1
            act = conv_transpose_s2(act, p["w"], p["b"], final_tanh=is_last)
            if not is_last:
                act = batchnorm_leaky(act, p["gamma"], p["beta"])
        return act

    return jax.jit(forward)


if __name__ == "__main__":
    # Generator(image_size=16, latent_dim=32, feat_map_size=8, num_channels=3)
    image_size, latent_dim, feat_map_size, num_channels = 16, 32, 8, 3
    batch = 2

    key = jax.random.PRNGKey(0)
    key, kparams, kx = jax.random.split(key, 3)
    cfg = make_layer_config(image_size, latent_dim, feat_map_size, num_channels)
    params = init_generator_params(kparams, cfg)
    latents = jax.random.normal(kx, (batch, latent_dim, 1, 1), jnp.float32)

    forward = make_generator_forward(image_size, latent_dim, feat_map_size,
                                     num_channels)
    out = jax.block_until_ready(forward(latents, params))

    assert out.shape == (batch, num_channels, image_size, image_size), out.shape
    assert bool(jnp.all(jnp.isfinite(out)))
    assert bool(jnp.all(jnp.abs(out) <= 1.0 + 1e-6))   # Tanh range
    print("KERNEL_OK")
</pallas_src>

<mosaic_0001>
module attributes {stable_mosaic.version = 11 : i64} {
  func.func @_dense_kernel(%arg0: i32, %arg1: memref<2x32xbf16, #tpu.memory_space<vmem>>, %arg2: memref<32x256xbf16, #tpu.memory_space<vmem>>, %arg3: memref<1x256xf32, #tpu.memory_space<vmem>>, %arg4: memref<2x256xf32, #tpu.memory_space<vmem>>) attributes {dimension_semantics = [#tpu.dimension_semantics<parallel>], iteration_bounds = array<i64: 1>, scalar_prefetch = 0 : i64, scratch_operands = 0 : i64, tpu.core_type = #tpu.core_type<tc>, window_params = [{transform_indices = @transform_0, window_bounds = array<i64: 2, 32>}, {pipeline_mode = #tpu.pipeline_mode<synchronous>, transform_indices = @transform_1, window_bounds = array<i64: 32, 256>}, {pipeline_mode = #tpu.pipeline_mode<synchronous>, transform_indices = @transform_2, window_bounds = array<i64: 1, 256>}, {transform_indices = @transform_3, window_bounds = array<i64: 2, 256>}]} {
    %c0 = arith.constant 0 : index
    %c0_0 = arith.constant 0 : index
    %0 = vector.load %arg1[%c0, %c0_0] : memref<2x32xbf16, #tpu.memory_space<vmem>>, vector<2x32xbf16>
    %c0_1 = arith.constant 0 : index
    %c0_2 = arith.constant 0 : index
    %1 = vector.load %arg2[%c0_1, %c0_2] : memref<32x256xbf16, #tpu.memory_space<vmem>>, vector<32x256xbf16>
    %cst = arith.constant dense<0.000000e+00> : vector<2x256xf32>
    %2 = tpu.matmul %0, %1, %cst {dimension_numbers = #tpu.dot_dimension_numbers<[1], [0], [0], [1], [0, 0, 1, 1], [], []>} : vector<2x32xbf16>, vector<32x256xbf16>, vector<2x256xf32> -> vector<2x256xf32>
    %c0_3 = arith.constant 0 : index
    %c0_4 = arith.constant 0 : index
    %3 = vector.load %arg3[%c0_3, %c0_4] : memref<1x256xf32, #tpu.memory_space<vmem>>, vector<1x256xf32>
    %4 = vector.broadcast %3 : vector<1x256xf32> to vector<2x256xf32>
    %5 = arith.addf %2, %4 : vector<2x256xf32>
    %c0_5 = arith.constant 0 : index
    %c0_6 = arith.constant 0 : index
    %6 = vector.load %arg4[%c0_5, %c0_6] : memref<2x256xf32, #tpu.memory_space<vmem>>, vector<2x256xf32>
    tpu.vector_store %arg4[%c0_5, %c0_6], %5 {strides = array<i32>} : memref<2x256xf32, #tpu.memory_space<vmem>>, vector<2x256xf32>,
    return
  }
  func.func @transform_0(%arg0: i32) -> (i32, i32) {
    %c0_i32 = arith.constant 0 : i32
    %c0_i32_0 = arith.constant 0 : i32
    return %arg0, %c0_i32 : i32, i32
  }
  func.func @transform_1(%arg0: i32) -> (i32, i32) {
    %c0_i32 = arith.constant 0 : i32
    %c0_i32_0 = arith.constant 0 : i32
    %c0_i32_1 = arith.constant 0 : i32
    return %c0_i32, %c0_i32_0 : i32, i32
  }
  func.func @transform_2(%arg0: i32) -> (i32, i32) {
    %c0_i32 = arith.constant 0 : i32
    %c0_i32_0 = arith.constant 0 : i32
    %c0_i32_1 = arith.constant 0 : i32
    return %c0_i32, %c0_i32_0 : i32, i32
  }
  func.func @transform_3(%arg0: i32) -> (i32, i32) {
    %c0_i32 = arith.constant 0 : i32
    %c0_i32_0 = arith.constant 0 : i32
    return %arg0, %c0_i32 : i32, i32
  }
}

module attributes {stable_mosaic.version = 11 : i64} {
  func.func @_bn_stats_kernel(%arg0: i32, %arg1: memref<1x16x16xf32, #tpu.memory_space<vmem>>, %arg2: memref<16x1xf32, #tpu.memory_space<vmem>>, %arg3: memref<16x1xf32, #tpu.memory_space<vmem>>) attributes {dimension_semantics = [#tpu.dimension_semantics<arbitrary>], iteration_bounds = array<i64: 2>, scalar_prefetch = 0 : i64, scratch_operands = 0 : i64, tpu.core_type = #tpu.core_type<tc>, window_params = [{transform_indices = @transform_0, window_bounds = array<i64: 1, 16, 16>}, {pipeline_mode = #tpu.pipeline_mode<synchronous>, transform_indices = @transform_1, window_bounds = array<i64: 16, 1>}, {pipeline_mode = #tpu.pipeline_mode<synchronous>, transform_indices = @transform_2, window_bounds = array<i64: 16, 1>}]} {
    %c0_i32 = arith.constant 0 : i32
    %0 = arith.cmpi eq, %arg0, %c0_i32 : i32
    %1 = arith.extui %0 : i1 to i32
    %c0_i32_0 = arith.constant 0 : i32
    %2 = arith.cmpi ne, %1, %c0_i32_0 : i32
    scf.if %2 {
      %cst_12 = arith.constant 0.000000e+00 : f32
      %16 = vector.broadcast %cst_12 : f32 to vector<16x1xf32>
      %c0_13 = arith.constant 0 : index
      %c0_14 = arith.constant 0 : index
      %17 = vector.load %arg2[%c0_13, %c0_14] : memref<16x1xf32, #tpu.memory_space<vmem>>, vector<16x1xf32>
      tpu.vector_store %arg2[%c0_13, %c0_14], %16 {strides = array<i32>} : memref<16x1xf32, #tpu.memory_space<vmem>>, vector<16x1xf32>,
      %cst_15 = arith.constant 0.000000e+00 : f32
      %18 = vector.broadcast %cst_15 : f32 to vector<16x1xf32>
      %c0_16 = arith.constant 0 : index
      %c0_17 = arith.constant 0 : index
      %19 = vector.load %arg3[%c0_16, %c0_17] : memref<16x1xf32, #tpu.memory_space<vmem>>, vector<16x1xf32>
      tpu.vector_store %arg3[%c0_16, %c0_17], %18 {strides = array<i32>} : memref<16x1xf32, #tpu.memory_space<vmem>>, vector<16x1xf32>,
    } else {
    }
    %c0 = arith.constant 0 : index
    %c0_1 = arith.constant 0 : index
    %c0_2 = arith.constant 0 : index
    %3 = vector.load %arg1[%c0, %c0_1, %c0_2] : memref<1x16x16xf32, #tpu.memory_space<vmem>>, vector<1x16x16xf32>
    %4 = vector.shape_cast %3 : vector<1x16x16xf32> to vector<16x16xf32>
    %c0_3 = arith.constant 0 : index
    %c0_4 = arith.constant 0 : index
    %5 = vector.load %arg2[%c0_3, %c0_4] : memref<16x1xf32, #tpu.memory_space<vmem>>, vector<16x1xf32>
    %cst = arith.constant dense<0.000000e+00> : vector<16xf32>
    %6 = vector.multi_reduction <add>, %4, %cst [1] : vector<16x16xf32> to vector<16xf32>
    %7 = vector.shape_cast %6 : vector<16xf32> to vector<16x1xf32>
    %8 = arith.addf %5, %7 : vector<16x1xf32>
    %c0_5 = arith.constant 0 : index
    %c0_6 = arith.constant 0 : index
    %9 = vector.load %arg2[%c0_5, %c0_6] : memref<16x1xf32, #tpu.memory_space<vmem>>, vector<16x1xf32>
    tpu.vector_store %arg2[%c0_5, %c0_6], %8 {strides = array<i32>} : memref<16x1xf32, #tpu.memory_space<vmem>>, vector<16x1xf32>,
    %c0_7 = arith.constant 0 : index
    %c0_8 = arith.constant 0 : index
    %10 = vector.load %arg3[%c0_7, %c0_8] : memref<16x1xf32, #tpu.memory_space<vmem>>, vector<16x1xf32>
    %11 = arith.mulf %4, %4 : vector<16x16xf32>
    %cst_9 = arith.constant dense<0.000000e+00> : vector<16xf32>
    %12 = vector.multi_reduction <add>, %11, %cst_9 [1] : vector<16x16xf32> to vector<16xf32>
    %13 = vector.shape_cast %12 : vector<16xf32> to vector<16x1xf32>
    %14 = arith.addf %10, %13 : vector<16x1xf32>
    %c0_10 = arith.constant 0 : index
    %c0_11 = arith.constant 0 : index
    %15 = vector.load %arg3[%c0_10, %c0_11] : memref<16x1xf32, #tpu.memory_space<vmem>>, vector<16x1xf32>
    tpu.vector_store %arg3[%c0_10, %c0_11], %14 {strides = array<i32>} : memref<16x1xf32, #tpu.memory_space<vmem>>, vector<16x1xf32>,
    return
  }
  func.func @transform_0(%arg0: i32) -> (i32, i32, i32) {
    %c0_i32 = arith.constant 0 : i32
    %c0_i32_0 = arith.constant 0 : i32
    %c0_i32_1 = arith.constant 0 : i32
    return %arg0, %c0_i32, %c0_i32_0 : i32, i32, i32
  }
  func.func @transform_1(%arg0: i32) -> (i32, i32) {
    %c0_i32 = arith.constant 0 : i32
    %c0_i32_0 = arith.constant 0 : i32
    %c0_i32_1 = arith.constant 0 : i32
    return %c0_i32, %c0_i32_0 : i32, i32
  }
  func.func @transform_2(%arg0: i32) -> (i32, i32) {
    %c0_i32 = arith.constant 0 : i32
    %c0_i32_0 = arith.constant 0 : i32
    %c0_i32_1 = arith.constant 0 : i32
    return %c0_i32, %c0_i32_0 : i32, i32
  }
}

module attributes {stable_mosaic.version = 11 : i64} {
  func.func @_bn_leaky_kernel(%arg0: i32, %arg1: memref<1x16x16xf32, #tpu.memory_space<vmem>>, %arg2: memref<16x1xf32, #tpu.memory_space<vmem>>, %arg3: memref<16x1xf32, #tpu.memory_space<vmem>>, %arg4: memref<16x1xf32, #tpu.memory_space<vmem>>, %arg5: memref<16x1xf32, #tpu.memory_space<vmem>>, %arg6: memref<1x16x16xf32, #tpu.memory_space<vmem>>) attributes {dimension_semantics = [#tpu.dimension_semantics<parallel>], iteration_bounds = array<i64: 2>, scalar_prefetch = 0 : i64, scratch_operands = 0 : i64, tpu.core_type = #tpu.core_type<tc>, window_params = [{transform_indices = @transform_0, window_bounds = array<i64: 1, 16, 16>}, {pipeline_mode = #tpu.pipeline_mode<synchronous>, transform_indices = @transform_1, window_bounds = array<i64: 16, 1>}, {pipeline_mode = #tpu.pipeline_mode<synchronous>, transform_indices = @transform_2, window_bounds = array<i64: 16, 1>}, {pipeline_mode = #tpu.pipeline_mode<synchronous>, transform_indices = @transform_3, window_bounds = array<i64: 16, 1>}, {pipeline_mode = #tpu.pipeline_mode<synchronous>, transform_indices = @transform_4, window_bounds = array<i64: 16, 1>}, {transform_indices = @transform_5, window_bounds = array<i64: 1, 16, 16>}]} {
    %c0 = arith.constant 0 : index
    %c0_0 = arith.constant 0 : index
    %c0_1 = arith.constant 0 : index
    %0 = vector.load %arg1[%c0, %c0_0, %c0_1] : memref<1x16x16xf32, #tpu.memory_space<vmem>>, vector<1x16x16xf32>
    %1 = vector.shape_cast %0 : vector<1x16x16xf32> to vector<16x16xf32>
    %c0_2 = arith.constant 0 : index
    %c0_3 = arith.constant 0 : index
    %2 = vector.load %arg2[%c0_2, %c0_3] : memref<16x1xf32, #tpu.memory_space<vmem>>, vector<16x1xf32>
    %cst = arith.constant 3.125000e-02 : f32
    %3 = vector.broadcast %cst : f32 to vector<16x1xf32>
    %4 = arith.mulf %2, %3 : vector<16x1xf32>
    %c0_4 = arith.constant 0 : index
    %c0_5 = arith.constant 0 : index
    %5 = vector.load %arg3[%c0_4, %c0_5] : memref<16x1xf32, #tpu.memory_space<vmem>>, vector<16x1xf32>
    %cst_6 = arith.constant 3.125000e-02 : f32
    %6 = vector.broadcast %cst_6 : f32 to vector<16x1xf32>
    %7 = arith.mulf %5, %6 : vector<16x1xf32>
    %8 = arith.mulf %4, %4 : vector<16x1xf32>
    %9 = arith.subf %7, %8 : vector<16x1xf32>
    %10 = vector.broadcast %4 : vector<16x1xf32> to vector<16x16xf32>
    %11 = arith.subf %1, %10 : vector<16x16xf32>
    %cst_7 = arith.constant 9.99999974E-6 : f32
    %12 = vector.broadcast %cst_7 : f32 to vector<16x1xf32>
    %13 = arith.addf %9, %12 : vector<16x1xf32>
    %14 = math.rsqrt %13 : vector<16x1xf32>
    %15 = vector.broadcast %14 : vector<16x1xf32> to vector<16x16xf32>
    %16 = arith.mulf %11, %15 : vector<16x16xf32>
    %c0_8 = arith.constant 0 : index
    %c0_9 = arith.constant 0 : index
    %17 = vector.load %arg4[%c0_8, %c0_9] : memref<16x1xf32, #tpu.memory_space<vmem>>, vector<16x1xf32>
    %18 = vector.broadcast %17 : vector<16x1xf32> to vector<16x16xf32>
    %19 = arith.mulf %16, %18 : vector<16x16xf32>
    %c0_10 = arith.constant 0 : index
    %c0_11 = arith.constant 0 : index
    %20 = vector.load %arg5[%c0_10, %c0_11] : memref<16x1xf32, #tpu.memory_space<vmem>>, vector<16x1xf32>
    %21 = vector.broadcast %20 : vector<16x1xf32> to vector<16x16xf32>
    %22 = arith.addf %19, %21 : vector<16x16xf32>
    %cst_12 = arith.constant 0.000000e+00 : f32
    %23 = vector.broadcast %cst_12 : f32 to vector<16x16xf32>
    %24 = arith.cmpf oge, %22, %23 : vector<16x16xf32>
    %cst_13 = arith.constant 2.000000e-01 : f32
    %25 = vector.broadcast %cst_13 : f32 to vector<16x16xf32>
    %26 = arith.mulf %25, %22 : vector<16x16xf32>
    %27 = arith.select %24, %22, %26 : vector<16x16xi1>, vector<16x16xf32>
    %c0_14 = arith.constant 0 : index
    %c0_15 = arith.constant 0 : index
    %c0_16 = arith.constant 0 : index
    %28 = vector.load %arg6[%c0_14, %c0_15, %c0_16] : memref<1x16x16xf32, #tpu.memory_space<vmem>>, vector<1x16x16xf32>
    %29 = vector.shape_cast %28 : vector<1x16x16xf32> to vector<16x16xf32>
    %30 = vector.shape_cast %27 : vector<16x16xf32> to vector<1x16x16xf32>
    tpu.vector_store %arg6[%c0_14, %c0_15, %c0_16], %30 {strides = array<i32>} : memref<1x16x16xf32, #tpu.memory_space<vmem>>, vector<1x16x16xf32>,
    return
  }
  func.func @transform_0(%arg0: i32) -> (i32, i32, i32) {
    %c0_i32 = arith.constant 0 : i32
    %c0_i32_0 = arith.constant 0 : i32
    %c0_i32_1 = arith.constant 0 : i32
    return %arg0, %c0_i32, %c0_i32_0 : i32, i32, i32
  }
  func.func @transform_1(%arg0: i32) -> (i32, i32) {
    %c0_i32 = arith.constant 0 : i32
    %c0_i32_0 = arith.constant 0 : i32
    %c0_i32_1 = arith.constant 0 : i32
    return %c0_i32, %c0_i32_0 : i32, i32
  }
  func.func @transform_2(%arg0: i32) -> (i32, i32) {
    %c0_i32 = arith.constant 0 : i32
    %c0_i32_0 = arith.constant 0 : i32
    %c0_i32_1 = arith.constant 0 : i32
    return %c0_i32, %c0_i32_0 : i32, i32
  }
  func.func @transform_3(%arg0: i32) -> (i32, i32) {
    %c0_i32 = arith.constant 0 : i32
    %c0_i32_0 = arith.constant 0 : i32
    %c0_i32_1 = arith.constant 0 : i32
    return %c0_i32, %c0_i32_0 : i32, i32
  }
  func.func @transform_4(%arg0: i32) -> (i32, i32) {
    %c0_i32 = arith.constant 0 : i32
    %c0_i32_0 = arith.constant 0 : i32
    %c0_i32_1 = arith.constant 0 : i32
    return %c0_i32, %c0_i32_0 : i32, i32
  }
  func.func @transform_5(%arg0: i32) -> (i32, i32, i32) {
    %c0_i32 = arith.constant 0 : i32
    %c0_i32_0 = arith.constant 0 : i32
    %c0_i32_1 = arith.constant 0 : i32
    return %arg0, %c0_i32, %c0_i32_0 : i32, i32, i32
  }
}

module attributes {stable_mosaic.version = 11 : i64} {
  func.func @_convt_s2_kernel(%arg0: i32, %arg1: memref<1x16x42xbf16, #tpu.memory_space<vmem>>, %arg2: memref<4x4x8x16xbf16, #tpu.memory_space<vmem>>, %arg3: memref<8x1xf32, #tpu.memory_space<vmem>>, %arg4: memref<1x4x8x24xf32, #tpu.memory_space<vmem>>) attributes {dimension_semantics = [#tpu.dimension_semantics<parallel>], iteration_bounds = array<i64: 2>, scalar_prefetch = 0 : i64, scratch_operands = 0 : i64, tpu.core_type = #tpu.core_type<tc>, window_params = [{transform_indices = @transform_0, window_bounds = array<i64: 1, 16, 42>}, {pipeline_mode = #tpu.pipeline_mode<synchronous>, transform_indices = @transform_1, window_bounds = array<i64: 4, 4, 8, 16>}, {pipeline_mode = #tpu.pipeline_mode<synchronous>, transform_indices = @transform_2, window_bounds = array<i64: 8, 1>}, {transform_indices = @transform_3, window_bounds = array<i64: 1, 4, 8, 24>}]} {
    %c0 = arith.constant 0 : index
    %c0_0 = arith.constant 0 : index
    %c0_1 = arith.constant 0 : index
    %0 = vector.load %arg1[%c0, %c0_0, %c0_1] : memref<1x16x42xbf16, #tpu.memory_space<vmem>>, vector<1x16x42xbf16>
    %1 = vector.shape_cast %0 : vector<1x16x42xbf16> to vector<16x42xbf16>
    %cst = arith.constant 0.000000e+00 : f32
    %2 = vector.broadcast %cst : f32 to vector<8x24xf32>
    %c0_2 = arith.constant 0 : index
    %c0_3 = arith.constant 0 : index
    %c0_4 = arith.constant 0 : index
    %c0_5 = arith.constant 0 : index
    %3 = vector.load %arg2[%c0_2, %c0_3, %c0_4, %c0_5] : memref<4x4x8x16xbf16, #tpu.memory_space<vmem>>, vector<1x1x8x16xbf16>
    %4 = vector.shape_cast %3 : vector<1x1x8x16xbf16> to vector<8x16xbf16>
    %5 = vector.extract_strided_slice %1 {offsets = [0, 0], sizes = [16, 24], strides = [1, 1]} : vector<16x42xbf16> to vector<16x24xbf16>
    %cst_6 = arith.constant dense<0.000000e+00> : vector<8x24xf32>
    %6 = tpu.matmul %4, %5, %cst_6 {dimension_numbers = #tpu.dot_dimension_numbers<[1], [0], [0], [1], [0, 0, 1, 1], [], []>} : vector<8x16xbf16>, vector<16x24xbf16>, vector<8x24xf32> -> vector<8x24xf32>
    %7 = arith.addf %2, %6 : vector<8x24xf32>
    %c0_7 = arith.constant 0 : index
    %c1 = arith.constant 1 : index
    %c0_8 = arith.constant 0 : index
    %c0_9 = arith.constant 0 : index
    %8 = vector.load %arg2[%c0_7, %c1, %c0_8, %c0_9] : memref<4x4x8x16xbf16, #tpu.memory_space<vmem>>, vector<1x1x8x16xbf16>
    %9 = vector.shape_cast %8 : vector<1x1x8x16xbf16> to vector<8x16xbf16>
    %10 = vector.extract_strided_slice %1 {offsets = [0, 1], sizes = [16, 24], strides = [1, 1]} : vector<16x42xbf16> to vector<16x24xbf16>
    %cst_10 = arith.constant dense<0.000000e+00> : vector<8x24xf32>
    %11 = tpu.matmul %9, %10, %cst_10 {dimension_numbers = #tpu.dot_dimension_numbers<[1], [0], [0], [1], [0, 0, 1, 1], [], []>} : vector<8x16xbf16>, vector<16x24xbf16>, vector<8x24xf32> -> vector<8x24xf32>
    %12 = arith.addf %7, %11 : vector<8x24xf32>
    %c0_11 = arith.constant 0 : index
    %c2 = arith.constant 2 : index
    %c0_12 = arith.constant 0 : index
    %c0_13 = arith.constant 0 : index
    %13 = vector.load %arg2[%c0_11, %c2, %c0_12, %c0_13] : memref<4x4x8x16xbf16, #tpu.memory_space<vmem>>, vector<1x1x8x16xbf16>
    %14 = vector.shape_cast %13 : vector<1x1x8x16xbf16> to vector<8x16xbf16>
    %15 = vector.extract_strided_slice %1 {offsets = [0, 6], sizes = [16, 24], strides = [1, 1]} : vector<16x42xbf16> to vector<16x24xbf16>
    %cst_14 = arith.constant dense<0.000000e+00> : vector<8x24xf32>
    %16 = tpu.matmul %14, %15, %cst_14 {dimension_numbers = #tpu.dot_dimension_numbers<[1], [0], [0], [1], [0, 0, 1, 1], [], []>} : vector<8x16xbf16>, vector<16x24xbf16>, vector<8x24xf32> -> vector<8x24xf32>
    %17 = arith.addf %12, %16 : vector<8x24xf32>
    %c0_15 = arith.constant 0 : index
    %c3 = arith.constant 3 : index
    %c0_16 = arith.constant 0 : index
    %c0_17 = arith.constant 0 : index
    %18 = vector.load %arg2[%c0_15, %c3, %c0_16, %c0_17] : memref<4x4x8x16xbf16, #tpu.memory_space<vmem>>, vector<1x1x8x16xbf16>
    %19 = vector.shape_cast %18 : vector<1x1x8x16xbf16> to vector<8x16xbf16>
    %20 = vector.extract_strided_slice %1 {offsets = [0, 7], sizes = [16, 24], strides = [1, 1]} : vector<16x42xbf16> to vector<16x24xbf16>
    %cst_18 = arith.constant dense<0.000000e+00> : vector<8x24xf32>
    %21 = tpu.matmul %19, %20, %cst_18 {dimension_numbers = #tpu.dot_dimension_numbers<[1], [0], [0], [1], [0, 0, 1, 1], [], []>} : vector<8x16xbf16>, vector<16x24xbf16>, vector<8x24xf32> -> vector<8x24xf32>
    %22 = arith.addf %17, %21 : vector<8x24xf32>
    %c0_19 = arith.constant 0 : index
    %c0_20 = arith.constant 0 : index
    %23 = vector.load %arg3[%c0_19, %c0_20] : memref<8x1xf32, #tpu.memory_space<vmem>>, vector<8x1xf32>
    %24 = vector.broadcast %23 : vector<8x1xf32> to vector<8x24xf32>
    %25 = arith.addf %22, %24 : vector<8x24xf32>
    %c0_21 = arith.constant 0 : index
    %c0_22 = arith.constant 0 : index
    %c0_23 = arith.constant 0 : index
    %c0_24 = arith.constant 0 : index
    %26 = vector.load %arg4[%c0_21, %c0_22, %c0_23, %c0_24] : memref<1x4x8x24xf32, #tpu.memory_space<vmem>>, vector<1x1x8x24xf32>
    %27 = vector.shape_cast %26 : vector<1x1x8x24xf32> to vector<8x24xf32>
    %28 = vector.shape_cast %25 : vector<8x24xf32> to vector<1x1x8x24xf32>
    tpu.vector_store %arg4[%c0_21, %c0_22, %c0_23, %c0_24], %28 {strides = array<i32>} : memref<1x4x8x24xf32, #tpu.memory_space<vmem>>, vector<1x1x8x24xf32>,
    %cst_25 = arith.constant 0.000000e+00 : f32
    %29 = vector.broadcast %cst_25 : f32 to vector<8x24xf32>
    %c1_26 = arith.constant 1 : index
    %c0_27 = arith.constant 0 : index
    %c0_28 = arith.constant 0 : index
    %c0_29 = arith.constant 0 : index
    %30 = vector.load %arg2[%c1_26, %c0_27, %c0_28, %c0_29] : memref<4x4x8x16xbf16, #tpu.memory_space<vmem>>, vector<1x1x8x16xbf16>
    %31 = vector.shape_cast %30 : vector<1x1x8x16xbf16> to vector<8x16xbf16>
    %32 = vector.extract_strided_slice %1 {offsets = [0, 1], sizes = [16, 24], strides = [1, 1]} : vector<16x42xbf16> to vector<16x24xbf16>
    %cst_30 = arith.constant dense<0.000000e+00> : vector<8x24xf32>
    %33 = tpu.matmul %31, %32, %cst_30 {dimension_numbers = #tpu.dot_dimension_numbers<[1], [0], [0], [1], [0, 0, 1, 1], [], []>} : vector<8x16xbf16>, vector<16x24xbf16>, vector<8x24xf32> -> vector<8x24xf32>
    %34 = arith.addf %29, %33 : vector<8x24xf32>
    %c1_31 = arith.constant 1 : index
    %c1_32 = arith.constant 1 : index
    %c0_33 = arith.constant 0 : index
    %c0_34 = arith.constant 0 : index
    %35 = vector.load %arg2[%c1_31, %c1_32, %c0_33, %c0_34] : memref<4x4x8x16xbf16, #tpu.memory_space<vmem>>, vector<1x1x8x16xbf16>
    %36 = vector.shape_cast %35 : vector<1x1x8x16xbf16> to vector<8x16xbf16>
    %37 = vector.extract_strided_slice %1 {offsets = [0, 2], sizes = [16, 24], strides = [1, 1]} : vector<16x42xbf16> to vector<16x24xbf16>
    %cst_35 = arith.constant dense<0.000000e+00> : vector<8x24xf32>
    %38 = tpu.matmul %36, %37, %cst_35 {dimension_numbers = #tpu.dot_dimension_numbers<[1], [0], [0], [1], [0, 0, 1, 1], [], []>} : vector<8x16xbf16>, vector<16x24xbf16>, vector<8x24xf32> -> vector<8x24xf32>
    %39 = arith.addf %34, %38 : vector<8x24xf32>
    %c1_36 = arith.constant 1 : index
    %c2_37 = arith.constant 2 : index
    %c0_38 = arith.constant 0 : index
    %c0_39 = arith.constant 0 : index
    %40 = vector.load %arg2[%c1_36, %c2_37, %c0_38, %c0_39] : memref<4x4x8x16xbf16, #tpu.memory_space<vmem>>, vector<1x1x8x16xbf16>
    %41 = vector.shape_cast %40 : vector<1x1x8x16xbf16> to vector<8x16xbf16>
    %42 = vector.extract_strided_slice %1 {offsets = [0, 7], sizes = [16, 24], strides = [1, 1]} : vector<16x42xbf16> to vector<16x24xbf16>
    %cst_40 = arith.constant dense<0.000000e+00> : vector<8x24xf32>
    %43 = tpu.matmul %41, %42, %cst_40 {dimension_numbers = #tpu.dot_dimension_numbers<[1], [0], [0], [1], [0, 0, 1, 1], [], []>} : vector<8x16xbf16>, vector<16x24xbf16>, vector<8x24xf32> -> vector<8x24xf32>
    %44 = arith.addf %39, %43 : vector<8x24xf32>
    %c1_41 = arith.constant 1 : index
    %c3_42 = arith.constant 3 : index
    %c0_43 = arith.constant 0 : index
    %c0_44 = arith.constant 0 : index
    %45 = vector.load %arg2[%c1_41, %c3_42, %c0_43, %c0_44] : memref<4x4x8x16xbf16, #tpu.memory_space<vmem>>, vector<1x1x8x16xbf16>
    %46 = vector.shape_cast %45 : vector<1x1x8x16xbf16> to vector<8x16xbf16>
    %47 = vector.extract_strided_slice %1 {offsets = [0, 8], sizes = [16, 24], strides = [1, 1]} : vector<16x42xbf16> to vector<16x24xbf16>
    %cst_45 = arith.constant dense<0.000000e+00> : vector<8x24xf32>
    %48 = tpu.matmul %46, %47, %cst_45 {dimension_numbers = #tpu.dot_dimension_numbers<[1], [0], [0], [1], [0, 0, 1, 1], [], []>} : vector<8x16xbf16>, vector<16x24xbf16>, vector<8x24xf32> -> vector<8x24xf32>
    %49 = arith.addf %44, %48 : vector<8x24xf32>
    %c0_46 = arith.constant 0 : index
    %c0_47 = arith.constant 0 : index
    %50 = vector.load %arg3[%c0_46, %c0_47] : memref<8x1xf32, #tpu.memory_space<vmem>>, vector<8x1xf32>
    %51 = vector.broadcast %50 : vector<8x1xf32> to vector<8x24xf32>
    %52 = arith.addf %49, %51 : vector<8x24xf32>
    %c0_48 = arith.constant 0 : index
    %c1_49 = arith.constant 1 : index
    %c0_50 = arith.constant 0 : index
    %c0_51 = arith.constant 0 : index
    %53 = vector.load %arg4[%c0_48, %c1_49, %c0_50, %c0_51] : memref<1x4x8x24xf32, #tpu.memory_space<vmem>>, vector<1x1x8x24xf32>
    %54 = vector.shape_cast %53 : vector<1x1x8x24xf32> to vector<8x24xf32>
    %55 = vector.shape_cast %52 : vector<8x24xf32> to vector<1x1x8x24xf32>
    tpu.vector_store %arg4[%c0_48, %c1_49, %c0_50, %c0_51], %55 {strides = array<i32>} : memref<1x4x8x24xf32, #tpu.memory_space<vmem>>, vector<1x1x8x24xf32>,
    %cst_52 = arith.constant 0.000000e+00 : f32
    %56 = vector.broadcast %cst_52 : f32 to vector<8x24xf32>
    %c2_53 = arith.constant 2 : index
    %c0_54 = arith.constant 0 : index
    %c0_55 = arith.constant 0 : index
    %c0_56 = arith.constant 0 : index
    %57 = vector.load %arg2[%c2_53, %c0_54, %c0_55, %c0_56] : memref<4x4x8x16xbf16, #tpu.memory_space<vmem>>, vector<1x1x8x16xbf16>
    %58 = vector.shape_cast %57 : vector<1x1x8x16xbf16> to vector<8x16xbf16>
    %59 = vector.extract_strided_slice %1 {offsets = [0, 6], sizes = [16, 24], strides = [1, 1]} : vector<16x42xbf16> to vector<16x24xbf16>
    %cst_57 = arith.constant dense<0.000000e+00> : vector<8x24xf32>
    %60 = tpu.matmul %58, %59, %cst_57 {dimension_numbers = #tpu.dot_dimension_numbers<[1], [0], [0], [1], [0, 0, 1, 1], [], []>} : vector<8x16xbf16>, vector<16x24xbf16>, vector<8x24xf32> -> vector<8x24xf32>
    %61 = arith.addf %56, %60 : vector<8x24xf32>
    %c2_58 = arith.constant 2 : index
    %c1_59 = arith.constant 1 : index
    %c0_60 = arith.constant 0 : index
    %c0_61 = arith.constant 0 : index
    %62 = vector.load %arg2[%c2_58, %c1_59, %c0_60, %c0_61] : memref<4x4x8x16xbf16, #tpu.memory_space<vmem>>, vector<1x1x8x16xbf16>
    %63 = vector.shape_cast %62 : vector<1x1x8x16xbf16> to vector<8x16xbf16>
    %64 = vector.extract_strided_slice %1 {offsets = [0, 7], sizes = [16, 24], strides = [1, 1]} : vector<16x42xbf16> to vector<16x24xbf16>
    %cst_62 = arith.constant dense<0.000000e+00> : vector<8x24xf32>
    %65 = tpu.matmul %63, %64, %cst_62 {dimension_numbers = #tpu.dot_dimension_numbers<[1], [0], [0], [1], [0, 0, 1, 1], [], []>} : vector<8x16xbf16>, vector<16x24xbf16>, vector<8x24xf32> -> vector<8x24xf32>
    %66 = arith.addf %61, %65 : vector<8x24xf32>
    %c2_63 = arith.constant 2 : index
    %c2_64 = arith.constant 2 : index
    %c0_65 = arith.constant 0 : index
    %c0_66 = arith.constant 0 : index
    %67 = vector.load %arg2[%c2_63, %c2_64, %c0_65, %c0_66] : memref<4x4x8x16xbf16, #tpu.memory_space<vmem>>, vector<1x1x8x16xbf16>
    %68 = vector.shape_cast %67 : vector<1x1x8x16xbf16> to vector<8x16xbf16>
    %69 = vector.extract_strided_slice %1 {offsets = [0, 12], sizes = [16, 24], strides = [1, 1]} : vector<16x42xbf16> to vector<16x24xbf16>
    %cst_67 = arith.constant dense<0.000000e+00> : vector<8x24xf32>
    %70 = tpu.matmul %68, %69, %cst_67 {dimension_numbers = #tpu.dot_dimension_numbers<[1], [0], [0], [1], [0, 0, 1, 1], [], []>} : vector<8x16xbf16>, vector<16x24xbf16>, vector<8x24xf32> -> vector<8x24xf32>
    %71 = arith.addf %66, %70 : vector<8x24xf32>
    %c2_68 = arith.constant 2 : index
    %c3_69 = arith.constant 3 : index
    %c0_70 = arith.constant 0 : index
    %c0_71 = arith.constant 0 : index
    %72 = vector.load %arg2[%c2_68, %c3_69, %c0_70, %c0_71] : memref<4x4x8x16xbf16, #tpu.memory_space<vmem>>, vector<1x1x8x16xbf16>
    %73 = vector.shape_cast %72 : vector<1x1x8x16xbf16> to vector<8x16xbf16>
    %74 = vector.extract_strided_slice %1 {offsets = [0, 13], sizes = [16, 24], strides = [1, 1]} : vector<16x42xbf16> to vector<16x24xbf16>
    %cst_72 = arith.constant dense<0.000000e+00> : vector<8x24xf32>
    %75 = tpu.matmul %73, %74, %cst_72 {dimension_numbers = #tpu.dot_dimension_numbers<[1], [0], [0], [1], [0, 0, 1, 1], [], []>} : vector<8x16xbf16>, vector<16x24xbf16>, vector<8x24xf32> -> vector<8x24xf32>
    %76 = arith.addf %71, %75 : vector<8x24xf32>
    %c0_73 = arith.constant 0 : index
    %c0_74 = arith.constant 0 : index
    %77 = vector.load %arg3[%c0_73, %c0_74] : memref<8x1xf32, #tpu.memory_space<vmem>>, vector<8x1xf32>
    %78 = vector.broadcast %77 : vector<8x1xf32> to vector<8x24xf32>
    %79 = arith.addf %76, %78 : vector<8x24xf32>
    %c0_75 = arith.constant 0 : index
    %c2_76 = arith.constant 2 : index
    %c0_77 = arith.constant 0 : index
    %c0_78 = arith.constant 0 : index
    %80 = vector.load %arg4[%c0_75, %c2_76, %c0_77, %c0_78] : memref<1x4x8x24xf32, #tpu.memory_space<vmem>>, vector<1x1x8x24xf32>
    %81 = vector.shape_cast %80 : vector<1x1x8x24xf32> to vector<8x24xf32>
    %82 = vector.shape_cast %79 : vector<8x24xf32> to vector<1x1x8x24xf32>
    tpu.vector_store %arg4[%c0_75, %c2_76, %c0_77, %c0_78], %82 {strides = array<i32>} : memref<1x4x8x24xf32, #tpu.memory_space<vmem>>, vector<1x1x8x24xf32>,
    %cst_79 = arith.constant 0.000000e+00 : f32
    %83 = vector.broadcast %cst_79 : f32 to vector<8x24xf32>
    %c3_80 = arith.constant 3 : index
    %c0_81 = arith.constant 0 : index
    %c0_82 = arith.constant 0 : index
    %c0_83 = arith.constant 0 : index
    %84 = vector.load %arg2[%c3_80, %c0_81, %c0_82, %c0_83] : memref<4x4x8x16xbf16, #tpu.memory_space<vmem>>, vector<1x1x8x16xbf16>
    %85 = vector.shape_cast %84 : vector<1x1x8x16xbf16> to vector<8x16xbf16>
    %86 = vector.extract_strided_slice %1 {offsets = [0, 7], sizes = [16, 24], strides = [1, 1]} : vector<16x42xbf16> to vector<16x24xbf16>
    %cst_84 = arith.constant dense<0.000000e+00> : vector<8x24xf32>
    %87 = tpu.matmul %85, %86, %cst_84 {dimension_numbers = #tpu.dot_dimension_numbers<[1], [0], [0], [1], [0, 0, 1, 1], [], []>} : vector<8x16xbf16>, vector<16x24xbf16>, vector<8x24xf32> -> vector<8x24xf32>
    %88 = arith.addf %83, %87 : vector<8x24xf32>
    %c3_85 = arith.constant 3 : index
    %c1_86 = arith.constant 1 : index
    %c0_87 = arith.constant 0 : index
    %c0_88 = arith.constant 0 : index
    %89 = vector.load %arg2[%c3_85, %c1_86, %c0_87, %c0_88] : memref<4x4x8x16xbf16, #tpu.memory_space<vmem>>, vector<1x1x8x16xbf16>
    %90 = vector.shape_cast %89 : vector<1x1x8x16xbf16> to vector<8x16xbf16>
    %91 = vector.extract_strided_slice %1 {offsets = [0, 8], sizes = [16, 24], strides = [1, 1]} : vector<16x42xbf16> to vector<16x24xbf16>
    %cst_89 = arith.constant dense<0.000000e+00> : vector<8x24xf32>
    %92 = tpu.matmul %90, %91, %cst_89 {dimension_numbers = #tpu.dot_dimension_numbers<[1], [0], [0], [1], [0, 0, 1, 1], [], []>} : vector<8x16xbf16>, vector<16x24xbf16>, vector<8x24xf32> -> vector<8x24xf32>
    %93 = arith.addf %88, %92 : vector<8x24xf32>
    %c3_90 = arith.constant 3 : index
    %c2_91 = arith.constant 2 : index
    %c0_92 = arith.constant 0 : index
    %c0_93 = arith.constant 0 : index
    %94 = vector.load %arg2[%c3_90, %c2_91, %c0_92, %c0_93] : memref<4x4x8x16xbf16, #tpu.memory_space<vmem>>, vector<1x1x8x16xbf16>
    %95 = vector.shape_cast %94 : vector<1x1x8x16xbf16> to vector<8x16xbf16>
    %96 = vector.extract_strided_slice %1 {offsets = [0, 13], sizes = [16, 24], strides = [1, 1]} : vector<16x42xbf16> to vector<16x24xbf16>
    %cst_94 = arith.constant dense<0.000000e+00> : vector<8x24xf32>
    %97 = tpu.matmul %95, %96, %cst_94 {dimension_numbers = #tpu.dot_dimension_numbers<[1], [0], [0], [1], [0, 0, 1, 1], [], []>} : vector<8x16xbf16>, vector<16x24xbf16>, vector<8x24xf32> -> vector<8x24xf32>
    %98 = arith.addf %93, %97 : vector<8x24xf32>
    %c3_95 = arith.constant 3 : index
    %c3_96 = arith.constant 3 : index
    %c0_97 = arith.constant 0 : index
    %c0_98 = arith.constant 0 : index
    %99 = vector.load %arg2[%c3_95, %c3_96, %c0_97, %c0_98] : memref<4x4x8x16xbf16, #tpu.memory_space<vmem>>, vector<1x1x8x16xbf16>
    %100 = vector.shape_cast %99 : vector<1x1x8x16xbf16> to vector<8x16xbf16>
    %101 = vector.extract_strided_slice %1 {offsets = [0, 14], sizes = [16, 24], strides = [1, 1]} : vector<16x42xbf16> to vector<16x24xbf16>
    %cst_99 = arith.constant dense<0.000000e+00> : vector<8x24xf32>
    %102 = tpu.matmul %100, %101, %cst_99 {dimension_numbers = #tpu.dot_dimension_numbers<[1], [0], [0], [1], [0, 0, 1, 1], [], []>} : vector<8x16xbf16>, vector<16x24xbf16>, vector<8x24xf32> -> vector<8x24xf32>
    %103 = arith.addf %98, %102 : vector<8x24xf32>
    %c0_100 = arith.constant 0 : index
    %c0_101 = arith.constant 0 : index
    %104 = vector.load %arg3[%c0_100, %c0_101] : memref<8x1xf32, #tpu.memory_space<vmem>>, vector<8x1xf32>
    %105 = vector.broadcast %104 : vector<8x1xf32> to vector<8x24xf32>
    %106 = arith.addf %103, %105 : vector<8x24xf32>
    %c0_102 = arith.constant 0 : index
    %c3_103 = arith.constant 3 : index
    %c0_104 = arith.constant 0 : index
    %c0_105 = arith.constant 0 : index
    %107 = vector.load %arg4[%c0_102, %c3_103, %c0_104, %c0_105] : memref<1x4x8x24xf32, #tpu.memory_space<vmem>>, vector<1x1x8x24xf32>
    %108 = vector.shape_cast %107 : vector<1x1x8x24xf32> to vector<8x24xf32>
    %109 = vector.shape_cast %106 : vector<8x24xf32> to vector<1x1x8x24xf32>
    tpu.vector_store %arg4[%c0_102, %c3_103, %c0_104, %c0_105], %109 {strides = array<i32>} : memref<1x4x8x24xf32, #tpu.memory_space<vmem>>, vector<1x1x8x24xf32>,
    return
  }
  func.func @transform_0(%arg0: i32) -> (i32, i32, i32) {
    %c0_i32 = arith.constant 0 : i32
    %c0_i32_0 = arith.constant 0 : i32
    %c0_i32_1 = arith.constant 0 : i32
    return %arg0, %c0_i32, %c0_i32_0 : i32, i32, i32
  }
  func.func @transform_1(%arg0: i32) -> (i32, i32, i32, i32) {
    %c0_i32 = arith.constant 0 : i32
    %c0_i32_0 = arith.constant 0 : i32
    %c0_i32_1 = arith.constant 0 : i32
    %c0_i32_2 = arith.constant 0 : i32
    %c0_i32_3 = arith.constant 0 : i32
    return %c0_i32, %c0_i32_0, %c0_i32_1, %c0_i32_2 : i32, i32, i32, i32
  }
  func.func @transform_2(%arg0: i32) -> (i32, i32) {
    %c0_i32 = arith.constant 0 : i32
    %c0_i32_0 = arith.constant 0 : i32
    %c0_i32_1 = arith.constant 0 : i32
    return %c0_i32, %c0_i32_0 : i32, i32
  }
  func.func @transform_3(%arg0: i32) -> (i32, i32, i32, i32) {
    %c0_i32 = arith.constant 0 : i32
    %c0_i32_0 = arith.constant 0 : i32
    %c0_i32_1 = arith.constant 0 : i32
    %c0_i32_2 = arith.constant 0 : i32
    return %arg0, %c0_i32, %c0_i32_0, %c0_i32_1 : i32, i32, i32, i32
  }
}

module attributes {stable_mosaic.version = 11 : i64} {
  func.func @_bn_stats_kernel(%arg0: i32, %arg1: memref<1x8x64xf32, #tpu.memory_space<vmem>>, %arg2: memref<8x1xf32, #tpu.memory_space<vmem>>, %arg3: memref<8x1xf32, #tpu.memory_space<vmem>>) attributes {dimension_semantics = [#tpu.dimension_semantics<arbitrary>], iteration_bounds = array<i64: 2>, scalar_prefetch = 0 : i64, scratch_operands = 0 : i64, tpu.core_type = #tpu.core_type<tc>, window_params = [{transform_indices = @transform_0, window_bounds = array<i64: 1, 8, 64>}, {pipeline_mode = #tpu.pipeline_mode<synchronous>, transform_indices = @transform_1, window_bounds = array<i64: 8, 1>}, {pipeline_mode = #tpu.pipeline_mode<synchronous>, transform_indices = @transform_2, window_bounds = array<i64: 8, 1>}]} {
    %c0_i32 = arith.constant 0 : i32
    %0 = arith.cmpi eq, %arg0, %c0_i32 : i32
    %1 = arith.extui %0 : i1 to i32
    %c0_i32_0 = arith.constant 0 : i32
    %2 = arith.cmpi ne, %1, %c0_i32_0 : i32
    scf.if %2 {
      %cst_12 = arith.constant 0.000000e+00 : f32
      %16 = vector.broadcast %cst_12 : f32 to vector<8x1xf32>
      %c0_13 = arith.constant 0 : index
      %c0_14 = arith.constant 0 : index
      %17 = vector.load %arg2[%c0_13, %c0_14] : memref<8x1xf32, #tpu.memory_space<vmem>>, vector<8x1xf32>
      tpu.vector_store %arg2[%c0_13, %c0_14], %16 {strides = array<i32>} : memref<8x1xf32, #tpu.memory_space<vmem>>, vector<8x1xf32>,
      %cst_15 = arith.constant 0.000000e+00 : f32
      %18 = vector.broadcast %cst_15 : f32 to vector<8x1xf32>
      %c0_16 = arith.constant 0 : index
      %c0_17 = arith.constant 0 : index
      %19 = vector.load %arg3[%c0_16, %c0_17] : memref<8x1xf32, #tpu.memory_space<vmem>>, vector<8x1xf32>
      tpu.vector_store %arg3[%c0_16, %c0_17], %18 {strides = array<i32>} : memref<8x1xf32, #tpu.memory_space<vmem>>, vector<8x1xf32>,
    } else {
    }
    %c0 = arith.constant 0 : index
    %c0_1 = arith.constant 0 : index
    %c0_2 = arith.constant 0 : index
    %3 = vector.load %arg1[%c0, %c0_1, %c0_2] : memref<1x8x64xf32, #tpu.memory_space<vmem>>, vector<1x8x64xf32>
    %4 = vector.shape_cast %3 : vector<1x8x64xf32> to vector<8x64xf32>
    %c0_3 = arith.constant 0 : index
    %c0_4 = arith.constant 0 : index
    %5 = vector.load %arg2[%c0_3, %c0_4] : memref<8x1xf32, #tpu.memory_space<vmem>>, vector<8x1xf32>
    %cst = arith.constant dense<0.000000e+00> : vector<8xf32>
    %6 = vector.multi_reduction <add>, %4, %cst [1] : vector<8x64xf32> to vector<8xf32>
    %7 = vector.shape_cast %6 : vector<8xf32> to vector<8x1xf32>
    %8 = arith.addf %5, %7 : vector<8x1xf32>
    %c0_5 = arith.constant 0 : index
    %c0_6 = arith.constant 0 : index
    %9 = vector.load %arg2[%c0_5, %c0_6] : memref<8x1xf32, #tpu.memory_space<vmem>>, vector<8x1xf32>
    tpu.vector_store %arg2[%c0_5, %c0_6], %8 {strides = array<i32>} : memref<8x1xf32, #tpu.memory_space<vmem>>, vector<8x1xf32>,
    %c0_7 = arith.constant 0 : index
    %c0_8 = arith.constant 0 : index
    %10 = vector.load %arg3[%c0_7, %c0_8] : memref<8x1xf32, #tpu.memory_space<vmem>>, vector<8x1xf32>
    %11 = arith.mulf %4, %4 : vector<8x64xf32>
    %cst_9 = arith.constant dense<0.000000e+00> : vector<8xf32>
    %12 = vector.multi_reduction <add>, %11, %cst_9 [1] : vector<8x64xf32> to vector<8xf32>
    %13 = vector.shape_cast %12 : vector<8xf32> to vector<8x1xf32>
    %14 = arith.addf %10, %13 : vector<8x1xf32>
    %c0_10 = arith.constant 0 : index
    %c0_11 = arith.constant 0 : index
    %15 = vector.load %arg3[%c0_10, %c0_11] : memref<8x1xf32, #tpu.memory_space<vmem>>, vector<8x1xf32>
    tpu.vector_store %arg3[%c0_10, %c0_11], %14 {strides = array<i32>} : memref<8x1xf32, #tpu.memory_space<vmem>>, vector<8x1xf32>,
    return
  }
  func.func @transform_0(%arg0: i32) -> (i32, i32, i32) {
    %c0_i32 = arith.constant 0 : i32
    %c0_i32_0 = arith.constant 0 : i32
    %c0_i32_1 = arith.constant 0 : i32
    return %arg0, %c0_i32, %c0_i32_0 : i32, i32, i32
  }
  func.func @transform_1(%arg0: i32) -> (i32, i32) {
    %c0_i32 = arith.constant 0 : i32
    %c0_i32_0 = arith.constant 0 : i32
    %c0_i32_1 = arith.constant 0 : i32
    return %c0_i32, %c0_i32_0 : i32, i32
  }
  func.func @transform_2(%arg0: i32) -> (i32, i32) {
    %c0_i32 = arith.constant 0 : i32
    %c0_i32_0 = arith.constant 0 : i32
    %c0_i32_1 = arith.constant 0 : i32
    return %c0_i32, %c0_i32_0 : i32, i32
  }
}

module attributes {stable_mosaic.version = 11 : i64} {
  func.func @_bn_leaky_kernel(%arg0: i32, %arg1: memref<1x8x64xf32, #tpu.memory_space<vmem>>, %arg2: memref<8x1xf32, #tpu.memory_space<vmem>>, %arg3: memref<8x1xf32, #tpu.memory_space<vmem>>, %arg4: memref<8x1xf32, #tpu.memory_space<vmem>>, %arg5: memref<8x1xf32, #tpu.memory_space<vmem>>, %arg6: memref<1x8x64xf32, #tpu.memory_space<vmem>>) attributes {dimension_semantics = [#tpu.dimension_semantics<parallel>], iteration_bounds = array<i64: 2>, scalar_prefetch = 0 : i64, scratch_operands = 0 : i64, tpu.core_type = #tpu.core_type<tc>, window_params = [{transform_indices = @transform_0, window_bounds = array<i64: 1, 8, 64>}, {pipeline_mode = #tpu.pipeline_mode<synchronous>, transform_indices = @transform_1, window_bounds = array<i64: 8, 1>}, {pipeline_mode = #tpu.pipeline_mode<synchronous>, transform_indices = @transform_2, window_bounds = array<i64: 8, 1>}, {pipeline_mode = #tpu.pipeline_mode<synchronous>, transform_indices = @transform_3, window_bounds = array<i64: 8, 1>}, {pipeline_mode = #tpu.pipeline_mode<synchronous>, transform_indices = @transform_4, window_bounds = array<i64: 8, 1>}, {transform_indices = @transform_5, window_bounds = array<i64: 1, 8, 64>}]} {
    %c0 = arith.constant 0 : index
    %c0_0 = arith.constant 0 : index
    %c0_1 = arith.constant 0 : index
    %0 = vector.load %arg1[%c0, %c0_0, %c0_1] : memref<1x8x64xf32, #tpu.memory_space<vmem>>, vector<1x8x64xf32>
    %1 = vector.shape_cast %0 : vector<1x8x64xf32> to vector<8x64xf32>
    %c0_2 = arith.constant 0 : index
    %c0_3 = arith.constant 0 : index
    %2 = vector.load %arg2[%c0_2, %c0_3] : memref<8x1xf32, #tpu.memory_space<vmem>>, vector<8x1xf32>
    %cst = arith.constant 7.812500e-03 : f32
    %3 = vector.broadcast %cst : f32 to vector<8x1xf32>
    %4 = arith.mulf %2, %3 : vector<8x1xf32>
    %c0_4 = arith.constant 0 : index
    %c0_5 = arith.constant 0 : index
    %5 = vector.load %arg3[%c0_4, %c0_5] : memref<8x1xf32, #tpu.memory_space<vmem>>, vector<8x1xf32>
    %cst_6 = arith.constant 7.812500e-03 : f32
    %6 = vector.broadcast %cst_6 : f32 to vector<8x1xf32>
    %7 = arith.mulf %5, %6 : vector<8x1xf32>
    %8 = arith.mulf %4, %4 : vector<8x1xf32>
    %9 = arith.subf %7, %8 : vector<8x1xf32>
    %10 = vector.broadcast %4 : vector<8x1xf32> to vector<8x64xf32>
    %11 = arith.subf %1, %10 : vector<8x64xf32>
    %cst_7 = arith.constant 9.99999974E-6 : f32
    %12 = vector.broadcast %cst_7 : f32 to vector<8x1xf32>
    %13 = arith.addf %9, %12 : vector<8x1xf32>
    %14 = math.rsqrt %13 : vector<8x1xf32>
    %15 = vector.broadcast %14 : vector<8x1xf32> to vector<8x64xf32>
    %16 = arith.mulf %11, %15 : vector<8x64xf32>
    %c0_8 = arith.constant 0 : index
    %c0_9 = arith.constant 0 : index
    %17 = vector.load %arg4[%c0_8, %c0_9] : memref<8x1xf32, #tpu.memory_space<vmem>>, vector<8x1xf32>
    %18 = vector.broadcast %17 : vector<8x1xf32> to vector<8x64xf32>
    %19 = arith.mulf %16, %18 : vector<8x64xf32>
    %c0_10 = arith.constant 0 : index
    %c0_11 = arith.constant 0 : index
    %20 = vector.load %arg5[%c0_10, %c0_11] : memref<8x1xf32, #tpu.memory_space<vmem>>, vector<8x1xf32>
    %21 = vector.broadcast %20 : vector<8x1xf32> to vector<8x64xf32>
    %22 = arith.addf %19, %21 : vector<8x64xf32>
    %cst_12 = arith.constant 0.000000e+00 : f32
    %23 = vector.broadcast %cst_12 : f32 to vector<8x64xf32>
    %24 = arith.cmpf oge, %22, %23 : vector<8x64xf32>
    %cst_13 = arith.constant 2.000000e-01 : f32
    %25 = vector.broadcast %cst_13 : f32 to vector<8x64xf32>
    %26 = arith.mulf %25, %22 : vector<8x64xf32>
    %27 = arith.select %24, %22, %26 : vector<8x64xi1>, vector<8x64xf32>
    %c0_14 = arith.constant 0 : index
    %c0_15 = arith.constant 0 : index
    %c0_16 = arith.constant 0 : index
    %28 = vector.load %arg6[%c0_14, %c0_15, %c0_16] : memref<1x8x64xf32, #tpu.memory_space<vmem>>, vector<1x8x64xf32>
    %29 = vector.shape_cast %28 : vector<1x8x64xf32> to vector<8x64xf32>
    %30 = vector.shape_cast %27 : vector<8x64xf32> to vector<1x8x64xf32>
    tpu.vector_store %arg6[%c0_14, %c0_15, %c0_16], %30 {strides = array<i32>} : memref<1x8x64xf32, #tpu.memory_space<vmem>>, vector<1x8x64xf32>,
    return
  }
  func.func @transform_0(%arg0: i32) -> (i32, i32, i32) {
    %c0_i32 = arith.constant 0 : i32
    %c0_i32_0 = arith.constant 0 : i32
    %c0_i32_1 = arith.constant 0 : i32
    return %arg0, %c0_i32, %c0_i32_0 : i32, i32, i32
  }
  func.func @transform_1(%arg0: i32) -> (i32, i32) {
    %c0_i32 = arith.constant 0 : i32
    %c0_i32_0 = arith.constant 0 : i32
    %c0_i32_1 = arith.constant 0 : i32
    return %c0_i32, %c0_i32_0 : i32, i32
  }
  func.func @transform_2(%arg0: i32) -> (i32, i32) {
    %c0_i32 = arith.constant 0 : i32
    %c0_i32_0 = arith.constant 0 : i32
    %c0_i32_1 = arith.constant 0 : i32
    return %c0_i32, %c0_i32_0 : i32, i32
  }
  func.func @transform_3(%arg0: i32) -> (i32, i32) {
    %c0_i32 = arith.constant 0 : i32
    %c0_i32_0 = arith.constant 0 : i32
    %c0_i32_1 = arith.constant 0 : i32
    return %c0_i32, %c0_i32_0 : i32, i32
  }
  func.func @transform_4(%arg0: i32) -> (i32, i32) {
    %c0_i32 = arith.constant 0 : i32
    %c0_i32_0 = arith.constant 0 : i32
    %c0_i32_1 = arith.constant 0 : i32
    return %c0_i32, %c0_i32_0 : i32, i32
  }
  func.func @transform_5(%arg0: i32) -> (i32, i32, i32) {
    %c0_i32 = arith.constant 0 : i32
    %c0_i32_0 = arith.constant 0 : i32
    %c0_i32_1 = arith.constant 0 : i32
    return %arg0, %c0_i32, %c0_i32_0 : i32, i32, i32
  }
}

module attributes {stable_mosaic.version = 11 : i64} {
  func.func @_convt_s2_kernel(%arg0: i32, %arg1: memref<1x8x110xbf16, #tpu.memory_space<vmem>>, %arg2: memref<4x4x3x8xbf16, #tpu.memory_space<vmem>>, %arg3: memref<3x1xf32, #tpu.memory_space<vmem>>, %arg4: memref<1x4x3x80xf32, #tpu.memory_space<vmem>>) attributes {dimension_semantics = [#tpu.dimension_semantics<parallel>], iteration_bounds = array<i64: 2>, scalar_prefetch = 0 : i64, scratch_operands = 0 : i64, tpu.core_type = #tpu.core_type<tc>, window_params = [{transform_indices = @transform_0, window_bounds = array<i64: 1, 8, 110>}, {pipeline_mode = #tpu.pipeline_mode<synchronous>, transform_indices = @transform_1, window_bounds = array<i64: 4, 4, 3, 8>}, {pipeline_mode = #tpu.pipeline_mode<synchronous>, transform_indices = @transform_2, window_bounds = array<i64: 3, 1>}, {transform_indices = @transform_3, window_bounds = array<i64: 1, 4, 3, 80>}]} {
    %c0 = arith.constant 0 : index
    %c0_0 = arith.constant 0 : index
    %c0_1 = arith.constant 0 : index
    %0 = vector.load %arg1[%c0, %c0_0, %c0_1] : memref<1x8x110xbf16, #tpu.memory_space<vmem>>, vector<1x8x110xbf16>
    %1 = vector.shape_cast %0 : vector<1x8x110xbf16> to vector<8x110xbf16>
    %cst = arith.constant 0.000000e+00 : f32
    %2 = vector.broadcast %cst : f32 to vector<3x80xf32>
    %c0_2 = arith.constant 0 : index
    %c0_3 = arith.constant 0 : index
    %c0_4 = arith.constant 0 : index
    %c0_5 = arith.constant 0 : index
    %3 = vector.load %arg2[%c0_2, %c0_3, %c0_4, %c0_5] : memref<4x4x3x8xbf16, #tpu.memory_space<vmem>>, vector<1x1x3x8xbf16>
    %4 = vector.shape_cast %3 : vector<1x1x3x8xbf16> to vector<3x8xbf16>
    %5 = vector.extract_strided_slice %1 {offsets = [0, 0], sizes = [8, 80], strides = [1, 1]} : vector<8x110xbf16> to vector<8x80xbf16>
    %cst_6 = arith.constant dense<0.000000e+00> : vector<3x80xf32>
    %6 = tpu.matmul %4, %5, %cst_6 {dimension_numbers = #tpu.dot_dimension_numbers<[1], [0], [0], [1], [0, 0, 1, 1], [], []>} : vector<3x8xbf16>, vector<8x80xbf16>, vector<3x80xf32> -> vector<3x80xf32>
    %7 = arith.addf %2, %6 : vector<3x80xf32>
    %c0_7 = arith.constant 0 : index
    %c1 = arith.constant 1 : index
    %c0_8 = arith.constant 0 : index
    %c0_9 = arith.constant 0 : index
    %8 = vector.load %arg2[%c0_7, %c1, %c0_8, %c0_9] : memref<4x4x3x8xbf16, #tpu.memory_space<vmem>>, vector<1x1x3x8xbf16>
    %9 = vector.shape_cast %8 : vector<1x1x3x8xbf16> to vector<3x8xbf16>
    %10 = vector.extract_strided_slice %1 {offsets = [0, 1], sizes = [8, 80], strides = [1, 1]} : vector<8x110xbf16> to vector<8x80xbf16>
    %cst_10 = arith.constant dense<0.000000e+00> : vector<3x80xf32>
    %11 = tpu.matmul %9, %10, %cst_10 {dimension_numbers = #tpu.dot_dimension_numbers<[1], [0], [0], [1], [0, 0, 1, 1], [], []>} : vector<3x8xbf16>, vector<8x80xbf16>, vector<3x80xf32> -> vector<3x80xf32>
    %12 = arith.addf %7, %11 : vector<3x80xf32>
    %c0_11 = arith.constant 0 : index
    %c2 = arith.constant 2 : index
    %c0_12 = arith.constant 0 : index
    %c0_13 = arith.constant 0 : index
    %13 = vector.load %arg2[%c0_11, %c2, %c0_12, %c0_13] : memref<4x4x3x8xbf16, #tpu.memory_space<vmem>>, vector<1x1x3x8xbf16>
    %14 = vector.shape_cast %13 : vector<1x1x3x8xbf16> to vector<3x8xbf16>
    %15 = vector.extract_strided_slice %1 {offsets = [0, 10], sizes = [8, 80], strides = [1, 1]} : vector<8x110xbf16> to vector<8x80xbf16>
    %cst_14 = arith.constant dense<0.000000e+00> : vector<3x80xf32>
    %16 = tpu.matmul %14, %15, %cst_14 {dimension_numbers = #tpu.dot_dimension_numbers<[1], [0], [0], [1], [0, 0, 1, 1], [], []>} : vector<3x8xbf16>, vector<8x80xbf16>, vector<3x80xf32> -> vector<3x80xf32>
    %17 = arith.addf %12, %16 : vector<3x80xf32>
    %c0_15 = arith.constant 0 : index
    %c3 = arith.constant 3 : index
    %c0_16 = arith.constant 0 : index
    %c0_17 = arith.constant 0 : index
    %18 = vector.load %arg2[%c0_15, %c3, %c0_16, %c0_17] : memref<4x4x3x8xbf16, #tpu.memory_space<vmem>>, vector<1x1x3x8xbf16>
    %19 = vector.shape_cast %18 : vector<1x1x3x8xbf16> to vector<3x8xbf16>
    %20 = vector.extract_strided_slice %1 {offsets = [0, 11], sizes = [8, 80], strides = [1, 1]} : vector<8x110xbf16> to vector<8x80xbf16>
    %cst_18 = arith.constant dense<0.000000e+00> : vector<3x80xf32>
    %21 = tpu.matmul %19, %20, %cst_18 {dimension_numbers = #tpu.dot_dimension_numbers<[1], [0], [0], [1], [0, 0, 1, 1], [], []>} : vector<3x8xbf16>, vector<8x80xbf16>, vector<3x80xf32> -> vector<3x80xf32>
    %22 = arith.addf %17, %21 : vector<3x80xf32>
    %c0_19 = arith.constant 0 : index
    %c0_20 = arith.constant 0 : index
    %23 = vector.load %arg3[%c0_19, %c0_20] : memref<3x1xf32, #tpu.memory_space<vmem>>, vector<3x1xf32>
    %24 = vector.broadcast %23 : vector<3x1xf32> to vector<3x80xf32>
    %25 = arith.addf %22, %24 : vector<3x80xf32>
    %26 = math.tanh %25 : vector<3x80xf32>
    %c0_21 = arith.constant 0 : index
    %c0_22 = arith.constant 0 : index
    %c0_23 = arith.constant 0 : index
    %c0_24 = arith.constant 0 : index
    %27 = vector.load %arg4[%c0_21, %c0_22, %c0_23, %c0_24] : memref<1x4x3x80xf32, #tpu.memory_space<vmem>>, vector<1x1x3x80xf32>
    %28 = vector.shape_cast %27 : vector<1x1x3x80xf32> to vector<3x80xf32>
    %29 = vector.shape_cast %26 : vector<3x80xf32> to vector<1x1x3x80xf32>
    tpu.vector_store %arg4[%c0_21, %c0_22, %c0_23, %c0_24], %29 {strides = array<i32>} : memref<1x4x3x80xf32, #tpu.memory_space<vmem>>, vector<1x1x3x80xf32>,
    %cst_25 = arith.constant 0.000000e+00 : f32
    %30 = vector.broadcast %cst_25 : f32 to vector<3x80xf32>
    %c1_26 = arith.constant 1 : index
    %c0_27 = arith.constant 0 : index
    %c0_28 = arith.constant 0 : index
    %c0_29 = arith.constant 0 : index
    %31 = vector.load %arg2[%c1_26, %c0_27, %c0_28, %c0_29] : memref<4x4x3x8xbf16, #tpu.memory_space<vmem>>, vector<1x1x3x8xbf16>
    %32 = vector.shape_cast %31 : vector<1x1x3x8xbf16> to vector<3x8xbf16>
    %33 = vector.extract_strided_slice %1 {offsets = [0, 1], sizes = [8, 80], strides = [1, 1]} : vector<8x110xbf16> to vector<8x80xbf16>
    %cst_30 = arith.constant dense<0.000000e+00> : vector<3x80xf32>
    %34 = tpu.matmul %32, %33, %cst_30 {dimension_numbers = #tpu.dot_dimension_numbers<[1], [0], [0], [1], [0, 0, 1, 1], [], []>} : vector<3x8xbf16>, vector<8x80xbf16>, vector<3x80xf32> -> vector<3x80xf32>
    %35 = arith.addf %30, %34 : vector<3x80xf32>
    %c1_31 = arith.constant 1 : index
    %c1_32 = arith.constant 1 : index
    %c0_33 = arith.constant 0 : index
    %c0_34 = arith.constant 0 : index
    %36 = vector.load %arg2[%c1_31, %c1_32, %c0_33, %c0_34] : memref<4x4x3x8xbf16, #tpu.memory_space<vmem>>, vector<1x1x3x8xbf16>
    %37 = vector.shape_cast %36 : vector<1x1x3x8xbf16> to vector<3x8xbf16>
    %38 = vector.extract_strided_slice %1 {offsets = [0, 2], sizes = [8, 80], strides = [1, 1]} : vector<8x110xbf16> to vector<8x80xbf16>
    %cst_35 = arith.constant dense<0.000000e+00> : vector<3x80xf32>
    %39 = tpu.matmul %37, %38, %cst_35 {dimension_numbers = #tpu.dot_dimension_numbers<[1], [0], [0], [1], [0, 0, 1, 1], [], []>} : vector<3x8xbf16>, vector<8x80xbf16>, vector<3x80xf32> -> vector<3x80xf32>
    %40 = arith.addf %35, %39 : vector<3x80xf32>
    %c1_36 = arith.constant 1 : index
    %c2_37 = arith.constant 2 : index
    %c0_38 = arith.constant 0 : index
    %c0_39 = arith.constant 0 : index
    %41 = vector.load %arg2[%c1_36, %c2_37, %c0_38, %c0_39] : memref<4x4x3x8xbf16, #tpu.memory_space<vmem>>, vector<1x1x3x8xbf16>
    %42 = vector.shape_cast %41 : vector<1x1x3x8xbf16> to vector<3x8xbf16>
    %43 = vector.extract_strided_slice %1 {offsets = [0, 11], sizes = [8, 80], strides = [1, 1]} : vector<8x110xbf16> to vector<8x80xbf16>
    %cst_40 = arith.constant dense<0.000000e+00> : vector<3x80xf32>
    %44 = tpu.matmul %42, %43, %cst_40 {dimension_numbers = #tpu.dot_dimension_numbers<[1], [0], [0], [1], [0, 0, 1, 1], [], []>} : vector<3x8xbf16>, vector<8x80xbf16>, vector<3x80xf32> -> vector<3x80xf32>
    %45 = arith.addf %40, %44 : vector<3x80xf32>
    %c1_41 = arith.constant 1 : index
    %c3_42 = arith.constant 3 : index
    %c0_43 = arith.constant 0 : index
    %c0_44 = arith.constant 0 : index
    %46 = vector.load %arg2[%c1_41, %c3_42, %c0_43, %c0_44] : memref<4x4x3x8xbf16, #tpu.memory_space<vmem>>, vector<1x1x3x8xbf16>
    %47 = vector.shape_cast %46 : vector<1x1x3x8xbf16> to vector<3x8xbf16>
    %48 = vector.extract_strided_slice %1 {offsets = [0, 12], sizes = [8, 80], strides = [1, 1]} : vector<8x110xbf16> to vector<8x80xbf16>
    %cst_45 = arith.constant dense<0.000000e+00> : vector<3x80xf32>
    %49 = tpu.matmul %47, %48, %cst_45 {dimension_numbers = #tpu.dot_dimension_numbers<[1], [0], [0], [1], [0, 0, 1, 1], [], []>} : vector<3x8xbf16>, vector<8x80xbf16>, vector<3x80xf32> -> vector<3x80xf32>
    %50 = arith.addf %45, %49 : vector<3x80xf32>
    %c0_46 = arith.constant 0 : index
    %c0_47 = arith.constant 0 : index
    %51 = vector.load %arg3[%c0_46, %c0_47] : memref<3x1xf32, #tpu.memory_space<vmem>>, vector<3x1xf32>
    %52 = vector.broadcast %51 : vector<3x1xf32> to vector<3x80xf32>
    %53 = arith.addf %50, %52 : vector<3x80xf32>
    %54 = math.tanh %53 : vector<3x80xf32>
    %c0_48 = arith.constant 0 : index
    %c1_49 = arith.constant 1 : index
    %c0_50 = arith.constant 0 : index
    %c0_51 = arith.constant 0 : index
    %55 = vector.load %arg4[%c0_48, %c1_49, %c0_50, %c0_51] : memref<1x4x3x80xf32, #tpu.memory_space<vmem>>, vector<1x1x3x80xf32>
    %56 = vector.shape_cast %55 : vector<1x1x3x80xf32> to vector<3x80xf32>
    %57 = vector.shape_cast %54 : vector<3x80xf32> to vector<1x1x3x80xf32>
    tpu.vector_store %arg4[%c0_48, %c1_49, %c0_50, %c0_51], %57 {strides = array<i32>} : memref<1x4x3x80xf32, #tpu.memory_space<vmem>>, vector<1x1x3x80xf32>,
    %cst_52 = arith.constant 0.000000e+00 : f32
    %58 = vector.broadcast %cst_52 : f32 to vector<3x80xf32>
    %c2_53 = arith.constant 2 : index
    %c0_54 = arith.constant 0 : index
    %c0_55 = arith.constant 0 : index
    %c0_56 = arith.constant 0 : index
    %59 = vector.load %arg2[%c2_53, %c0_54, %c0_55, %c0_56] : memref<4x4x3x8xbf16, #tpu.memory_space<vmem>>, vector<1x1x3x8xbf16>
    %60 = vector.shape_cast %59 : vector<1x1x3x8xbf16> to vector<3x8xbf16>
    %61 = vector.extract_strided_slice %1 {offsets = [0, 10], sizes = [8, 80], strides = [1, 1]} : vector<8x110xbf16> to vector<8x80xbf16>
    %cst_57 = arith.constant dense<0.000000e+00> : vector<3x80xf32>
    %62 = tpu.matmul %60, %61, %cst_57 {dimension_numbers = #tpu.dot_dimension_numbers<[1], [0], [0], [1], [0, 0, 1, 1], [], []>} : vector<3x8xbf16>, vector<8x80xbf16>, vector<3x80xf32> -> vector<3x80xf32>
    %63 = arith.addf %58, %62 : vector<3x80xf32>
    %c2_58 = arith.constant 2 : index
    %c1_59 = arith.constant 1 : index
    %c0_60 = arith.constant 0 : index
    %c0_61 = arith.constant 0 : index
    %64 = vector.load %arg2[%c2_58, %c1_59, %c0_60, %c0_61] : memref<4x4x3x8xbf16, #tpu.memory_space<vmem>>, vector<1x1x3x8xbf16>
    %65 = vector.shape_cast %64 : vector<1x1x3x8xbf16> to vector<3x8xbf16>
    %66 = vector.extract_strided_slice %1 {offsets = [0, 11], sizes = [8, 80], strides = [1, 1]} : vector<8x110xbf16> to vector<8x80xbf16>
    %cst_62 = arith.constant dense<0.000000e+00> : vector<3x80xf32>
    %67 = tpu.matmul %65, %66, %cst_62 {dimension_numbers = #tpu.dot_dimension_numbers<[1], [0], [0], [1], [0, 0, 1, 1], [], []>} : vector<3x8xbf16>, vector<8x80xbf16>, vector<3x80xf32> -> vector<3x80xf32>
    %68 = arith.addf %63, %67 : vector<3x80xf32>
    %c2_63 = arith.constant 2 : index
    %c2_64 = arith.constant 2 : index
    %c0_65 = arith.constant 0 : index
    %c0_66 = arith.constant 0 : index
    %69 = vector.load %arg2[%c2_63, %c2_64, %c0_65, %c0_66] : memref<4x4x3x8xbf16, #tpu.memory_space<vmem>>, vector<1x1x3x8xbf16>
    %70 = vector.shape_cast %69 : vector<1x1x3x8xbf16> to vector<3x8xbf16>
    %71 = vector.extract_strided_slice %1 {offsets = [0, 20], sizes = [8, 80], strides = [1, 1]} : vector<8x110xbf16> to vector<8x80xbf16>
    %cst_67 = arith.constant dense<0.000000e+00> : vector<3x80xf32>
    %72 = tpu.matmul %70, %71, %cst_67 {dimension_numbers = #tpu.dot_dimension_numbers<[1], [0], [0], [1], [0, 0, 1, 1], [], []>} : vector<3x8xbf16>, vector<8x80xbf16>, vector<3x80xf32> -> vector<3x80xf32>
    %73 = arith.addf %68, %72 : vector<3x80xf32>
    %c2_68 = arith.constant 2 : index
    %c3_69 = arith.constant 3 : index
    %c0_70 = arith.constant 0 : index
    %c0_71 = arith.constant 0 : index
    %74 = vector.load %arg2[%c2_68, %c3_69, %c0_70, %c0_71] : memref<4x4x3x8xbf16, #tpu.memory_space<vmem>>, vector<1x1x3x8xbf16>
    %75 = vector.shape_cast %74 : vector<1x1x3x8xbf16> to vector<3x8xbf16>
    %76 = vector.extract_strided_slice %1 {offsets = [0, 21], sizes = [8, 80], strides = [1, 1]} : vector<8x110xbf16> to vector<8x80xbf16>
    %cst_72 = arith.constant dense<0.000000e+00> : vector<3x80xf32>
    %77 = tpu.matmul %75, %76, %cst_72 {dimension_numbers = #tpu.dot_dimension_numbers<[1], [0], [0], [1], [0, 0, 1, 1], [], []>} : vector<3x8xbf16>, vector<8x80xbf16>, vector<3x80xf32> -> vector<3x80xf32>
    %78 = arith.addf %73, %77 : vector<3x80xf32>
    %c0_73 = arith.constant 0 : index
    %c0_74 = arith.constant 0 : index
    %79 = vector.load %arg3[%c0_73, %c0_74] : memref<3x1xf32, #tpu.memory_space<vmem>>, vector<3x1xf32>
    %80 = vector.broadcast %79 : vector<3x1xf32> to vector<3x80xf32>
    %81 = arith.addf %78, %80 : vector<3x80xf32>
    %82 = math.tanh %81 : vector<3x80xf32>
    %c0_75 = arith.constant 0 : index
    %c2_76 = arith.constant 2 : index
    %c0_77 = arith.constant 0 : index
    %c0_78 = arith.constant 0 : index
    %83 = vector.load %arg4[%c0_75, %c2_76, %c0_77, %c0_78] : memref<1x4x3x80xf32, #tpu.memory_space<vmem>>, vector<1x1x3x80xf32>
    %84 = vector.shape_cast %83 : vector<1x1x3x80xf32> to vector<3x80xf32>
    %85 = vector.shape_cast %82 : vector<3x80xf32> to vector<1x1x3x80xf32>
    tpu.vector_store %arg4[%c0_75, %c2_76, %c0_77, %c0_78], %85 {strides = array<i32>} : memref<1x4x3x80xf32, #tpu.memory_space<vmem>>, vector<1x1x3x80xf32>,
    %cst_79 = arith.constant 0.000000e+00 : f32
    %86 = vector.broadcast %cst_79 : f32 to vector<3x80xf32>
    %c3_80 = arith.constant 3 : index
    %c0_81 = arith.constant 0 : index
    %c0_82 = arith.constant 0 : index
    %c0_83 = arith.constant 0 : index
    %87 = vector.load %arg2[%c3_80, %c0_81, %c0_82, %c0_83] : memref<4x4x3x8xbf16, #tpu.memory_space<vmem>>, vector<1x1x3x8xbf16>
    %88 = vector.shape_cast %87 : vector<1x1x3x8xbf16> to vector<3x8xbf16>
    %89 = vector.extract_strided_slice %1 {offsets = [0, 11], sizes = [8, 80], strides = [1, 1]} : vector<8x110xbf16> to vector<8x80xbf16>
    %cst_84 = arith.constant dense<0.000000e+00> : vector<3x80xf32>
    %90 = tpu.matmul %88, %89, %cst_84 {dimension_numbers = #tpu.dot_dimension_numbers<[1], [0], [0], [1], [0, 0, 1, 1], [], []>} : vector<3x8xbf16>, vector<8x80xbf16>, vector<3x80xf32> -> vector<3x80xf32>
    %91 = arith.addf %86, %90 : vector<3x80xf32>
    %c3_85 = arith.constant 3 : index
    %c1_86 = arith.constant 1 : index
    %c0_87 = arith.constant 0 : index
    %c0_88 = arith.constant 0 : index
    %92 = vector.load %arg2[%c3_85, %c1_86, %c0_87, %c0_88] : memref<4x4x3x8xbf16, #tpu.memory_space<vmem>>, vector<1x1x3x8xbf16>
    %93 = vector.shape_cast %92 : vector<1x1x3x8xbf16> to vector<3x8xbf16>
    %94 = vector.extract_strided_slice %1 {offsets = [0, 12], sizes = [8, 80], strides = [1, 1]} : vector<8x110xbf16> to vector<8x80xbf16>
    %cst_89 = arith.constant dense<0.000000e+00> : vector<3x80xf32>
    %95 = tpu.matmul %93, %94, %cst_89 {dimension_numbers = #tpu.dot_dimension_numbers<[1], [0], [0], [1], [0, 0, 1, 1], [], []>} : vector<3x8xbf16>, vector<8x80xbf16>, vector<3x80xf32> -> vector<3x80xf32>
    %96 = arith.addf %91, %95 : vector<3x80xf32>
    %c3_90 = arith.constant 3 : index
    %c2_91 = arith.constant 2 : index
    %c0_92 = arith.constant 0 : index
    %c0_93 = arith.constant 0 : index
    %97 = vector.load %arg2[%c3_90, %c2_91, %c0_92, %c0_93] : memref<4x4x3x8xbf16, #tpu.memory_space<vmem>>, vector<1x1x3x8xbf16>
    %98 = vector.shape_cast %97 : vector<1x1x3x8xbf16> to vector<3x8xbf16>
    %99 = vector.extract_strided_slice %1 {offsets = [0, 21], sizes = [8, 80], strides = [1, 1]} : vector<8x110xbf16> to vector<8x80xbf16>
    %cst_94 = arith.constant dense<0.000000e+00> : vector<3x80xf32>
    %100 = tpu.matmul %98, %99, %cst_94 {dimension_numbers = #tpu.dot_dimension_numbers<[1], [0], [0], [1], [0, 0, 1, 1], [], []>} : vector<3x8xbf16>, vector<8x80xbf16>, vector<3x80xf32> -> vector<3x80xf32>
    %101 = arith.addf %96, %100 : vector<3x80xf32>
    %c3_95 = arith.constant 3 : index
    %c3_96 = arith.constant 3 : index
    %c0_97 = arith.constant 0 : index
    %c0_98 = arith.constant 0 : index
    %102 = vector.load %arg2[%c3_95, %c3_96, %c0_97, %c0_98] : memref<4x4x3x8xbf16, #tpu.memory_space<vmem>>, vector<1x1x3x8xbf16>
    %103 = vector.shape_cast %102 : vector<1x1x3x8xbf16> to vector<3x8xbf16>
    %104 = vector.extract_strided_slice %1 {offsets = [0, 22], sizes = [8, 80], strides = [1, 1]} : vector<8x110xbf16> to vector<8x80xbf16>
    %cst_99 = arith.constant dense<0.000000e+00> : vector<3x80xf32>
    %105 = tpu.matmul %103, %104, %cst_99 {dimension_numbers = #tpu.dot_dimension_numbers<[1], [0], [0], [1], [0, 0, 1, 1], [], []>} : vector<3x8xbf16>, vector<8x80xbf16>, vector<3x80xf32> -> vector<3x80xf32>
    %106 = arith.addf %101, %105 : vector<3x80xf32>
    %c0_100 = arith.constant 0 : index
    %c0_101 = arith.constant 0 : index
    %107 = vector.load %arg3[%c0_100, %c0_101] : memref<3x1xf32, #tpu.memory_space<vmem>>, vector<3x1xf32>
    %108 = vector.broadcast %107 : vector<3x1xf32> to vector<3x80xf32>
    %109 = arith.addf %106, %108 : vector<3x80xf32>
    %110 = math.tanh %109 : vector<3x80xf32>
    %c0_102 = arith.constant 0 : index
    %c3_103 = arith.constant 3 : index
    %c0_104 = arith.constant 0 : index
    %c0_105 = arith.constant 0 : index
    %111 = vector.load %arg4[%c0_102, %c3_103, %c0_104, %c0_105] : memref<1x4x3x80xf32, #tpu.memory_space<vmem>>, vector<1x1x3x80xf32>
    %112 = vector.shape_cast %111 : vector<1x1x3x80xf32> to vector<3x80xf32>
    %113 = vector.shape_cast %110 : vector<3x80xf32> to vector<1x1x3x80xf32>
    tpu.vector_store %arg4[%c0_102, %c3_103, %c0_104, %c0_105], %113 {strides = array<i32>} : memref<1x4x3x80xf32, #tpu.memory_space<vmem>>, vector<1x1x3x80xf32>,
    return
  }
  func.func @transform_0(%arg0: i32) -> (i32, i32, i32) {
    %c0_i32 = arith.constant 0 : i32
    %c0_i32_0 = arith.constant 0 : i32
    %c0_i32_1 = arith.constant 0 : i32
    return %arg0, %c0_i32, %c0_i32_0 : i32, i32, i32
  }
  func.func @transform_1(%arg0: i32) -> (i32, i32, i32, i32) {
    %c0_i32 = arith.constant 0 : i32
    %c0_i32_0 = arith.constant 0 : i32
    %c0_i32_1 = arith.constant 0 : i32
    %c0_i32_2 = arith.constant 0 : i32
    %c0_i32_3 = arith.constant 0 : i32
    return %c0_i32, %c0_i32_0, %c0_i32_1, %c0_i32_2 : i32, i32, i32, i32
  }
  func.func @transform_2(%arg0: i32) -> (i32, i32) {
    %c0_i32 = arith.constant 0 : i32
    %c0_i32_0 = arith.constant 0 : i32
    %c0_i32_1 = arith.constant 0 : i32
    return %c0_i32, %c0_i32_0 : i32, i32
  }
  func.func @transform_3(%arg0: i32) -> (i32, i32, i32, i32) {
    %c0_i32 = arith.constant 0 : i32
    %c0_i32_0 = arith.constant 0 : i32
    %c0_i32_1 = arith.constant 0 : i32
    %c0_i32_2 = arith.constant 0 : i32
    return %arg0, %c0_i32, %c0_i32_0, %c0_i32_1 : i32, i32, i32, i32
  }
}

</mosaic_0001>

<bundles_post_ra>
// kernel: forward.7
= control target key start
LH: loop header
LB: loop body
LE: loop exit
PB: predicated region body
PF: predicated region fallthrough
CT: control target
= control target key end

     0   :  { %vm46_vm0 = vcmask 261120   ;;  %vm79_vm1 = vcmask 1041408   ;;  %s162_s1 = inlined_call_operand.vmem [shape: bf16[32,256], index: 1, kind: input, shape index: {}]   ;;  %s163_s0 = inlined_call_operand.vmem [shape: bf16[2,32], index: 0, kind: input, shape index: {}]   ;;  %s164_s2 = inlined_call_operand.vmem [shape: f32[1,256], index: 2, kind: input, shape index: {}]   ;;  %s165_s3 = inlined_call_operand.vmem [shape: f32[2,256], index: 3, kind: output, shape index: {}]  }
   0x1   :  { %v97_v0 = vld [vmem:[%s162_s1 + $0x10] sm:$0xf]  ;;  %v108_v1 = vld [vmem:[%s162_s1 + $0x14] sm:$0xf0]  ;;  %v107_v2 = vld [vmem:[%s162_s1 + $0x14] sm:$0xf] }
   0x2   :  { %v98_v3 = vor.u32 %v108_v1, %v97_v0  ;;  %v99_v4 = vld [vmem:[%s162_s1 + $0x18] sm:$0xf0]  ;;  %v89_v5 = vld [vmem:[%s162_s1] sm:$0xf]  ;;  %v106_v6 = vld [vmem:[%s162_s1 + $0x4] sm:$0xf0] }
   0x3   :  { %v102_v7 = vor.u32 %v107_v2, %v99_v4  ;;  %v105_v8 = vld [vmem:[%s162_s1 + $0x4] sm:$0xf]  ;;  %v91_v9 = vld [vmem:[%s162_s1 + $0x8] sm:$0xf0]  ;;  %v90_v10 = vor.u32 %v106_v6, %v89_v5  ;;  %v15_v12 = vld [vmem:[%s163_s0] sm:$0x1] }
   0x4   :  { %56 = vmatpush.bf16.msra.mxu0 %v98_v3  ;;  %v94_v11 = vor.u32 %v105_v8, %v91_v9  ;;  %v20_v13 = vld [vmem:[%s164_s2] sm:$0x3] }
   0x5   :  { %69 = vmatpush.bf16.msra.mxu1 %v102_v7  ;;  %v23_v14 = vperm.slane %v20_v13, 1  ;;  %v22_v15 = vperm.slane %v20_v13, 0 }
   0x8   :  { %57 = vmatpush.bf16.msra.mxu0 %v90_v10 }
   0x9   :  { %70 = vmatpush.bf16.msra.mxu1 %v94_v11 }
   0xb   :  { %103 = vmatmul.msk.bf16.vlgmr.msra.gmra.mxu0 %vm46_vm0, %v15_v12 }
   0xc   :  { %104 = vmatmul.msk.bf16.vlgmr.msra.gmra.mxu1 %vm46_vm0, %v15_v12 }
  0x88   :  { %v59_v16 = vpop.f32.mrf.mxu0 }
  0x89   :  { %v72_v17 = vpop.f32.mrf.mxu1  ;;  %v60_v19 = vadd.f32 %v59_v16, %v22_v15 }
  0x8a   :  { %v73_v18 = vadd.f32 %v72_v17, %v23_v14 }
  0x8c   :  { %v78_v20 = vrot.slane %v73_v18, 6 }
  0x8e   :  { %v80_v21 = vsel %vm79_vm1, %v60_v19, %v78_v20 }
  0x8f   :  { %82 = vst [vmem:[%s165_s3] sm:$0xf] %v80_v21 }
  0x90   :  { %v61_v22 = vpop.f32.mrf.mxu0 }
  0x91   :  { %v74_v23 = vpop.f32.mrf.mxu1 }

// kernel: forward.8
= control target key start
LH: loop header
LB: loop body
LE: loop exit
PB: predicated region body
PF: predicated region fallthrough
CT: control target
= control target key end

     0   :  { %s243_s9 = smov 0   ;;  %s293_s0 = inlined_call_operand.vmem [shape: f32[2,16,16], index: 0, kind: input, shape index: {}]   ;;  %s294_s1 = inlined_call_operand.vmem [shape: f32[16,1], index: 1, kind: output, shape index: {0}]   ;;  %s295_s2 = inlined_call_operand.vmem [shape: f32[16,1], index: 2, kind: output, shape index: {1}]  }
   0x1 LB: > { %s200_s10 = sadd.s32 4294967295, %s225_s9   ;;  %p203_p0 = scmp.ge.s32.totalorder %s225_s9, 1  ;;  %s225_s9 = sphi %s243_s9, %s13_s9  }
   0x2   : > { %p105_p1 = scmp.lt.s32.totalorder %s225_s9, 3 }
   0x4   : > { %p106_p2 = pnand %p203_p0, %p105_p1 }
   0x5   : > { %p122_p3 = scmp.lt.s32.totalorder (!%p106_p2), %s200_s10, 1  ;;  %p206_p4 = scmp.ne.s32.totalorder (!%p106_p2), %s200_s10, 0 }
   0x6   : > { %109 = sbr.rel (%p106_p2) target bundleno = 153 (0x99), region = 24 }
   0xb   : > { %s123_s11 = scalar_select %p122_p3, %s200_s10, 1 }
   0xc   : > { %130 = sbr.rel (%p206_p4) target bundleno = 22 (0x16), region = 28 }
   0xd   : > { %s209_s12 = sshll.u32 %s123_s11, 4 }
   0xe   : > { %s126_s15 = scalar_lea.vmem %s293_s0, %s209_s12 }
  0x11   : > { %vm131_vm0 = vcmask 7168   ;;  %v227_v0 = vmov 0.0  }
  0x12   : > { %132 = vst.msk [vmem:[%s294_s1] sm:$0xff] %vm131_vm0, %v227_v0 }
  0x13   : > { %133 = vst.msk [vmem:[%s294_s1 + $0x8] sm:$0xff] %vm131_vm0, %v227_v0 }
  0x14   : > { %134 = vst.msk [vmem:[%s295_s2] sm:$0xff] %vm131_vm0, %v227_v0 }
  0x15   : > { %135 = vst.msk [vmem:[%s295_s2 + $0x8] sm:$0xff] %vm131_vm0, %v227_v0 }
  0x16 PF: > { %v136_v1 = vld [vmem:[%s126_s15] sm:$0xff]  ;;  %vm140_vm1 = vcmask 130048   ;;  %v137_v4 = vld [vmem:[%s126_s15 + $0x8] sm:$0xff]  ;;  %vm149_vm2 = vcmask 7168  }
  0x17   : > { %v154_v2 = vmul.f32 %v136_v1, %v136_v1  ;;  %v141_v3 = vsel %vm140_vm1, %v136_v1, 0.0  ;;  %v155_v6 = vmul.f32 %v137_v4, %v137_v4  ;;  %v144_v7 = vsel %vm140_vm1, %v137_v4, 0.0 }
  0x18   : > { %142 = vadd.xlane.f32.xlu0 %v141_v3 }
  0x19   : > { %v156_v5 = vsel %vm140_vm1, %v154_v2, 0.0  ;;  %v159_v8 = vsel %vm140_vm1, %v155_v6, 0.0  ;;  %v138_v9 = vld [vmem:[%s294_s1] sm:$0xff] }
  0x1a   : > { %157 = vadd.xlane.f32.xlu1 %v156_v5  ;;  %v139_v15 = vld [vmem:[%s294_s1 + $0x8] sm:$0xff] }
  0x1b   : > { %v152_v10 = vld [vmem:[%s295_s2] sm:$0xff] }
  0x1c   : > { %v153_v16 = vld [vmem:[%s295_s2 + $0x8] sm:$0xff] }
  0x20   : > { %145 = vadd.xlane.f32.xlu0 %v144_v7 }
  0x22   : > { %160 = vadd.xlane.f32.xlu1 %v159_v8 }
  0x8b   : > { %v143_v11 = vpop.xlane.xlu0 %142 }
  0x8c   : > { %v147_v12 = vadd.f32 %v143_v11, %v138_v9 }
  0x8d   : > { %v158_v13 = vpop.xlane.xlu1 %157 }
  0x8e   : > { %v162_v14 = vadd.f32 %v158_v13, %v152_v10  ;;  %150 = vst.msk [vmem:[%s294_s1] sm:$0xff] %vm149_vm2, %v147_v12 }
  0x90   : > { %164 = vst.msk [vmem:[%s295_s2] sm:$0xff] %vm149_vm2, %v162_v14 }
  0x93   : > { %v146_v17 = vpop.xlane.xlu0 %145 }
  0x94   : > { %v148_v18 = vadd.f32 %v146_v17, %v139_v15 }
  0x95   : > { %v161_v19 = vpop.xlane.xlu1 %160 }
  0x96   : > { %v163_v20 = vadd.f32 %v161_v19, %v153_v16  ;;  %151 = vst.msk [vmem:[%s294_s1 + $0x8] sm:$0xff] %vm149_vm2, %v148_v18 }
  0x98   : > { %165 = vst.msk [vmem:[%s295_s2 + $0x8] sm:$0xff] %vm149_vm2, %v163_v20 }
  0x99 PF: > { %s13_s9 = sadd.s32 1, %s225_s9  }
  0x9a   : > { %p10_p5 = scmp.ge.s32.totalorder %s13_s9, 4  }
  0x9c   :  { %12 = sbr.rel (!%p10_p5) target bundleno = 1 (0x1), region = 62 }

// kernel: forward.9
= control target key start
LH: loop header
LB: loop body
LE: loop exit
PB: predicated region body
PF: predicated region fallthrough
CT: control target
= control target key end

     0   :  { %s445_s18 = smov 0   ;;  %s490_s0 = inlined_call_operand.vmem [shape: f32[2,16,16], index: 0, kind: input, shape index: {}]   ;;  %s491_s1 = inlined_call_operand.vmem [shape: f32[16,1], index: 1, kind: input, shape index: {}]   ;;  %s492_s2 = inlined_call_operand.vmem [shape: f32[16,1], index: 2, kind: input, shape index: {}]   ;;  %s493_s3 = inlined_call_operand.vmem [shape: f32[16,1], index: 3, kind: input, shape index: {}]   ;;  %s494_s4 = inlined_call_operand.vmem [shape: f32[16,1], index: 4, kind: input, shape index: {}]   ;;  %s495_s5 = inlined_call_operand.vmem [shape: f32[2,16,16], index: 5, kind: output, shape index: {}]  }
   0x1 LB: > { %s377_s19 = sadd.s32 4294967295, %s412_s18   ;;  %p381_p0 = scmp.ge.s32.totalorder %s412_s18, 1  ;;  %s412_s18 = sphi %s445_s18, %s15_s18  }
   0x2   : > { %p187_p1 = scmp.lt.s32.totalorder %s412_s18, 3 }
   0x4   : > { %p188_p2 = pnand %p381_p0, %p187_p1 }
   0x5   : > { %p215_p3 = scmp.lt.s32.totalorder (!%p188_p2), %s377_s19, 1 }
   0x6   : > { %191 = sbr.rel (%p188_p2) target bundleno = 175 (0xaf), region = 40 }
   0xb   : > { %v227_v0 = vld [vmem:[%s491_s1] sm:$0xff]  ;;  %v228_v2 = vld [vmem:[%s491_s1 + $0x8] sm:$0xff]  ;;  %v414_v3 = vmov 0   ;;  %s497_s19 = smov (!%p215_p3, %s377_s19), 1  ;;  %vm319_vm7 = vcmask 130048  }
   0xc   : > { %v231_v1 = vld [vmem:[%s492_s2] sm:$0xff]  ;;  %399 = vset.pattern.permute.xlu0 %v414_v3  ;;  %v229_v4 = vmul.f32 0.03125, %v227_v0  ;;  %v230_v6 = vmul.f32 0.03125, %v228_v2  ;;  %v232_v7 = vld [vmem:[%s492_s2 + $0x8] sm:$0xff]  ;;  %401 = vset.pattern.permute.xlu1 %v414_v3  ;;  %s388_s11 = sshll.u32 %s497_s19, 4 }
   0xd   : > { %v233_v5 = vmul.f32 0.03125, %v231_v1  ;;  %v234_v8 = vmul.f32 0.03125, %v232_v7  ;;  %400 = vset.pattern.permute.xlu2 %v414_v3  ;;  %v285_v15 = vld [vmem:[%s493_s3] sm:$0xff]  ;;  %v286_v21 = vld [vmem:[%s493_s3 + $0x8] sm:$0xff]  ;;  %s219_s14 = scalar_lea.vmem %s490_s0, %s388_s11  ;;  %s224_s17 = scalar_lea.vmem %s495_s5, %s388_s11 }
   0xe   : > { %241 = vperm.xlu0 %399, %v229_v4   ;;  %v235_v9 = vmul.f32 %v229_v4, %v229_v4  ;;  %v236_v10 = vmul.f32 %v230_v6, %v230_v6  ;;  %289 = vperm.xlu2 %400, %v285_v15   ;;  %v299_v18 = vld [vmem:[%s494_s4] sm:$0xff]  ;;  %v300_v32 = vld [vmem:[%s494_s4 + $0x8] sm:$0xff] }
   0xf   : > { %v225_v34 = vld [vmem:[%s219_s14] sm:$0xff]  ;;  %v226_v43 = vld [vmem:[%s219_s14 + $0x8] sm:$0xff] }
  0x10   : > { %v237_v11 = vsub.f32 %v233_v5, %v235_v9  ;;  %v238_v12 = vsub.f32 %v234_v8, %v236_v10 }
  0x12   : > { %v251_v13 = vadd.f32 1e-05, %v237_v11  ;;  %v252_v14 = vadd.f32 1e-05, %v238_v12 }
  0x14   : > { %402 = vrsqrt.f32 %v251_v13  ;;  %vm259_vm0 = vweird.f32 %v251_v13  ;;  %vm269_vm3 = vweird.f32 %v252_v14 }
  0x15   : > { %404 = vrsqrt.f32 %v252_v14 }
  0x16   : > { %246 = vperm.xlu0 %399, %v230_v6   ;;  %294 = vperm.xlu2 %400, %v286_v21  }
  0x1a   : > { %v403_v16 = vpop.eup %402 }
  0x1b   : > { %v405_v17 = vpop.eup %404  ;;  %v254_v19 = vmul.f32 %v403_v16, %v251_v13  ;;  %vm260_vm1 = vweird.f32 %v403_v16 }
  0x1c   : > { %v264_v20 = vmul.f32 %v405_v17, %v252_v14  ;;  %vm261_vm2 = vmor %vm259_vm0, %vm260_vm1  ;;  %vm270_vm4 = vweird.f32 %v405_v17 }
  0x1d   : > { %v255_v22 = vmul.f32 %v403_v16, %v254_v19  ;;  %vm271_vm5 = vmor %vm269_vm3, %vm270_vm4 }
  0x1e   : > { %303 = vperm.xlu0 %399, %v299_v18   ;;  %v265_v23 = vmul.f32 %v405_v17, %v264_v20 }
  0x1f   : > { %v256_v24 = vmul.f32 0.5, %v255_v22 }
  0x20   : > { %v266_v25 = vmul.f32 0.5, %v265_v23 }
  0x21   : > { %v257_v26 = vsub.f32 1.5, %v256_v24 }
  0x22   : > { %v267_v28 = vsub.f32 1.5, %v266_v25 }
  0x23   : > { %v258_v27 = vmul.f32 %v403_v16, %v257_v26 }
  0x24   : > { %v268_v30 = vmul.f32 %v405_v17, %v267_v28 }
  0x25   : > { %v262_v29 = vsel %vm261_vm2, %v403_v16, %v258_v27 }
  0x26   : > { %275 = vperm.xlu1 %401, %v262_v29   ;;  %v272_v31 = vsel %vm271_vm5, %v405_v17, %v268_v30 }
  0x2e   : > { %280 = vperm.xlu1 %401, %v272_v31  }
  0x36   : > { %308 = vperm.xlu1 %401, %v300_v32  }
  0x68   : > { %v290_v39 = vpop.permute.xlu2 %289 }
  0x70   : > { %v295_v49 = vpop.permute.xlu2 %294 }
  0x80   : > { %v242_v33 = vpop.permute.xlu0 %241 }
  0x81   : > { %v249_v36 = vsub.f32 %v225_v34, %v242_v33 }
  0x88   : > { %v247_v35 = vpop.permute.xlu0 %246 }
  0x89   : > { %v250_v46 = vsub.f32 %v226_v43, %v247_v35 }
  0x90   : > { %v304_v41 = vpop.permute.xlu0 %303 }
  0x98   : > { %v276_v37 = vpop.permute.xlu1 %275 }
  0x99   : > { %v283_v38 = vmul.f32 %v276_v37, %v249_v36 }
  0x9b   : > { %v297_v40 = vmul.f32 %v290_v39, %v283_v38 }
  0x9d   : > { %v311_v42 = vadd.f32 %v304_v41, %v297_v40 }
  0x9f   : > { %vm313_vm6 = vcmp.ge.f32.partialorder %v311_v42, 0.0  ;;  %v315_v44 = vmul.f32 0.2, %v311_v42 }
  0xa0   : > { %v281_v45 = vpop.permute.xlu1 %280 }
  0xa1   : > { %v317_v47 = vsel %vm313_vm6, %v311_v42, %v315_v44  ;;  %v284_v48 = vmul.f32 %v281_v45, %v250_v46 }
  0xa2   : > { %320 = vst.msk [vmem:[%s224_s17] sm:$0xff] %vm319_vm7, %v317_v47 }
  0xa3   : > { %v298_v50 = vmul.f32 %v295_v49, %v284_v48 }
  0xa8   : > { %v309_v51 = vpop.permute.xlu1 %308 }
  0xa9   : > { %v312_v52 = vadd.f32 %v309_v51, %v298_v50 }
  0xab   : > { %vm314_vm8 = vcmp.ge.f32.partialorder %v312_v52, 0.0  ;;  %v316_v53 = vmul.f32 0.2, %v312_v52 }
  0xad   : > { %v318_v54 = vsel %vm314_vm8, %v312_v52, %v316_v53 }
  0xae   : > { %321 = vst.msk [vmem:[%s224_s17 + $0x8] sm:$0xff] %vm319_vm7, %v318_v54 }
  0xaf PF: > { %s15_s18 = sadd.s32 1, %s412_s18  }
  0xb0   : > { %p12_p4 = scmp.ge.s32.totalorder %s15_s18, 4  }
  0xb2   :  { %14 = sbr.rel (!%p12_p4) target bundleno = 1 (0x1), region = 70 }

// kernel: forward.11
= control target key start
LH: loop header
LB: loop body
LE: loop exit
PB: predicated region body
PF: predicated region fallthrough
CT: control target
= control target key end

     0   :  { %s222_s9 = smov 0   ;;  %s254_s0 = inlined_call_operand.vmem [shape: f32[2,8,64], index: 0, kind: input, shape index: {}]   ;;  %s255_s1 = inlined_call_operand.vmem [shape: f32[8,1], index: 1, kind: output, shape index: {0}]   ;;  %s256_s2 = inlined_call_operand.vmem [shape: f32[8,1], index: 2, kind: output, shape index: {1}]  }
   0x1 LB: > { %s181_s10 = sadd.s32 4294967295, %s204_s9   ;;  %p184_p0 = scmp.ge.s32.totalorder %s204_s9, 1  ;;  %s204_s9 = sphi %s222_s9, %s13_s9  }
   0x2   : > { %p104_p1 = scmp.lt.s32.totalorder %s204_s9, 3 }
   0x4   : > { %p105_p2 = pnand %p184_p0, %p104_p1 }
   0x5   : > { %p120_p3 = scmp.lt.s32.totalorder (!%p105_p2), %s181_s10, 1  ;;  %p186_p4 = scmp.ne.s32.totalorder (!%p105_p2), %s181_s10, 0 }
   0x6   : > { %108 = sbr.rel (%p105_p2) target bundleno = 149 (0x95), region = 24 }
   0xb   : > { %s121_s11 = scalar_select %p120_p3, %s181_s10, 1 }
   0xc   : > { %127 = sbr.rel (%p186_p4) target bundleno = 20 (0x14), region = 28 }
   0xd   : > { %s185_s12 = sshll.u32 %s121_s11, 3 }
   0xe   : > { %s123_s15 = scalar_lea.vmem %s254_s0, %s185_s12 }
  0x11   : > { %vm128_vm0 = vcmask 7168   ;;  %v206_v0 = vmov 0.0  }
  0x12   : > { %129 = vst.msk [vmem:[%s255_s1] sm:$0xff] %vm128_vm0, %v206_v0 }
  0x13   : > { %130 = vst.msk [vmem:[%s256_s2] sm:$0xff] %vm128_vm0, %v206_v0 }
  0x14 PF: > { %v131_v1 = vld [vmem:[%s123_s15] sm:$0xff]  ;;  %vm133_vm1 = vcmask 523264   ;;  %vm138_vm2 = vcmask 7168  }
  0x15   : > { %v134_v2 = vsel %vm133_vm1, %v131_v1, 0.0  ;;  %v141_v3 = vmul.f32 %v131_v1, %v131_v1 }
  0x16   : > { %135 = vadd.xlane.f32.xlu0 %v134_v2 }
  0x17   : > { %v142_v4 = vsel %vm133_vm1, %v141_v3, 0.0 }
  0x19   : > { %v132_v5 = vld [vmem:[%s255_s1] sm:$0xff] }
  0x1a   : > { %v140_v8 = vld [vmem:[%s256_s2] sm:$0xff] }
  0x1e   : > { %143 = vadd.xlane.f32.xlu0 %v142_v4 }
  0x89   : > { %v136_v6 = vpop.xlane.xlu0 %135 }
  0x8a   : > { %v137_v7 = vadd.f32 %v136_v6, %v132_v5 }
  0x8c   : > { %139 = vst.msk [vmem:[%s255_s1] sm:$0xff] %vm138_vm2, %v137_v7 }
  0x91   : > { %v144_v9 = vpop.xlane.xlu0 %143 }
  0x92   : > { %v145_v10 = vadd.f32 %v144_v9, %v140_v8 }
  0x94   : > { %146 = vst.msk [vmem:[%s256_s2] sm:$0xff] %vm138_vm2, %v145_v10 }
  0x95 PF: > { %s13_s9 = sadd.s32 1, %s204_s9  }
  0x96   : > { %p10_p5 = scmp.ge.s32.totalorder %s13_s9, 4  }
  0x98   :  { %12 = sbr.rel (!%p10_p5) target bundleno = 1 (0x1), region = 62 }

// kernel: forward.12
= control target key start
LH: loop header
LB: loop body
LE: loop exit
PB: predicated region body
PF: predicated region fallthrough
CT: control target
= control target key end

     0   :  { %s383_s18 = smov 0   ;;  %s416_s0 = inlined_call_operand.vmem [shape: f32[2,8,64], index: 0, kind: input, shape index: {}]   ;;  %s417_s1 = inlined_call_operand.vmem [shape: f32[8,1], index: 1, kind: input, shape index: {}]   ;;  %s418_s2 = inlined_call_operand.vmem [shape: f32[8,1], index: 2, kind: input, shape index: {}]   ;;  %s419_s3 = inlined_call_operand.vmem [shape: f32[8,1], index: 3, kind: input, shape index: {}]   ;;  %s420_s4 = inlined_call_operand.vmem [shape: f32[8,1], index: 4, kind: input, shape index: {}]   ;;  %s421_s5 = inlined_call_operand.vmem [shape: f32[2,8,64], index: 5, kind: output, shape index: {}]  }
   0x1 LB: > { %s322_s19 = sadd.s32 4294967295, %s350_s18   ;;  %p326_p0 = scmp.ge.s32.totalorder %s350_s18, 1  ;;  %s350_s18 = sphi %s383_s18, %s15_s18  }
   0x2   : > { %p186_p1 = scmp.lt.s32.totalorder %s350_s18, 3 }
   0x4   : > { %p187_p2 = pnand %p326_p0, %p186_p1 }
   0x5   : > { %p212_p3 = scmp.lt.s32.totalorder (!%p187_p2), %s322_s19, 1 }
   0x6   : > { %190 = sbr.rel (%p187_p2) target bundleno = 164 (0xa4), region = 40 }
   0xb   : > { %v250_v0 = vld [vmem:[%s419_s3] sm:$0xff]  ;;  %v352_v3 = vmov 0   ;;  %s423_s19 = smov (!%p212_p3, %s322_s19), 1  ;;  %vm267_vm3 = vcmask 523264  }
   0xc   : > { %v221_v1 = vld [vmem:[%s417_s1] sm:$0xff]  ;;  %341 = vset.pattern.permute.xlu1 %v352_v3  ;;  %340 = vset.pattern.permute.xlu0 %v352_v3  ;;  %s327_s28 = sshll.u32 %s423_s19, 3 }
   0xd   : > { %v223_v2 = vld [vmem:[%s418_s2] sm:$0xff]  ;;  %v222_v4 = vmul.f32 0.0078125, %v221_v1  ;;  %253 = vperm.xlu1 %341, %v250_v0   ;;  %s215_s6 = scalar_lea.vmem %s416_s0, %s327_s28  ;;  %s219_s9 = scalar_lea.vmem %s421_s5, %s327_s28 }
   0xe   : > { %v224_v5 = vmul.f32 0.0078125, %v223_v2  ;;  %v257_v9 = vld [vmem:[%s420_s4] sm:$0xff] }
   0xf   : > { %229 = vperm.xlu0 %340, %v222_v4   ;;  %v225_v6 = vmul.f32 %v222_v4, %v222_v4  ;;  %v220_v19 = vld [vmem:[%s215_s6] sm:$0xff] }
  0x11   : > { %v226_v7 = vsub.f32 %v224_v5, %v225_v6 }
  0x13   : > { %v233_v8 = vadd.f32 1e-05, %v226_v7 }
  0x15   : > { %342 = vrsqrt.f32 %v233_v8  ;;  %260 = vperm.xlu1 %341, %v257_v9   ;;  %vm240_vm0 = vweird.f32 %v233_v8 }
  0x1b   : > { %v343_v10 = vpop.eup %342 }
  0x1c   : > { %v235_v11 = vmul.f32 %v343_v10, %v233_v8  ;;  %vm241_vm1 = vweird.f32 %v343_v10 }
  0x1d   : > { %vm242_vm2 = vmor %vm240_vm0, %vm241_vm1 }
  0x1e   : > { %v236_v12 = vmul.f32 %v343_v10, %v235_v11 }
  0x20   : > { %v237_v13 = vmul.f32 0.5, %v236_v12 }
  0x22   : > { %v238_v14 = vsub.f32 1.5, %v237_v13 }
  0x24   : > { %v239_v15 = vmul.f32 %v343_v10, %v238_v14 }
  0x26   : > { %v243_v16 = vsel %vm242_vm2, %v343_v10, %v239_v15 }
  0x27   : > { %246 = vperm.xlu0 %340, %v243_v16  }
  0x7f   : > { %v254_v18 = vpop.permute.xlu1 %253 }
  0x81   : > { %v230_v17 = vpop.permute.xlu0 %229 }
  0x82   : > { %v232_v20 = vsub.f32 %v220_v19, %v230_v17 }
  0x87   : > { %v261_v24 = vpop.permute.xlu1 %260 }
  0x99   : > { %v247_v21 = vpop.permute.xlu0 %246 }
  0x9a   : > { %v249_v22 = vmul.f32 %v247_v21, %v232_v20 }
  0x9c   : > { %v256_v23 = vmul.f32 %v254_v18, %v249_v22 }
  0x9e   : > { %v263_v25 = vadd.f32 %v261_v24, %v256_v23 }
  0xa0   : > { %vm264_vm4 = vcmp.ge.f32.partialorder %v263_v25, 0.0  ;;  %v265_v26 = vmul.f32 0.2, %v263_v25 }
  0xa2   : > { %v266_v27 = vsel %vm264_vm4, %v263_v25, %v265_v26 }
  0xa3   : > { %268 = vst.msk [vmem:[%s219_s9] sm:$0xff] %vm267_vm3, %v266_v27 }
  0xa4 PF: > { %s15_s18 = sadd.s32 1, %s350_s18  }
  0xa5   : > { %p12_p4 = scmp.ge.s32.totalorder %s15_s18, 4  }
  0xa7   :  { %14 = sbr.rel (!%p12_p4) target bundleno = 1 (0x1), region = 70 }

// kernel: forward.10
= control target key start
LH: loop header
LB: loop body
LE: loop exit
PB: predicated region body
PF: predicated region fallthrough
CT: control target
= control target key end

     0   :  { %s700_s12 = smov 0   ;;  %s798_s0 = inlined_call_operand.vmem [shape: bf16[2,16,42], index: 0, kind: input, shape index: {}]   ;;  %s799_s1 = inlined_call_operand.vmem [shape: bf16[4,4,8,16], index: 1, kind: input, shape index: {}]   ;;  %s800_s2 = inlined_call_operand.vmem [shape: f32[8,1], index: 2, kind: input, shape index: {}]   ;;  %s801_s3 = inlined_call_operand.vmem [shape: f32[2,4,8,24], index: 3, kind: output, shape index: {}]  }
   0x1 LB: > { %s591_s13 = sadd.s32 4294967295, %s669_s12   ;;  %p595_p0 = scmp.ge.s32.totalorder %s669_s12, 1  ;;  %s669_s12 = sphi %s700_s12, %s13_s12  }
   0x2   : > { %p137_p1 = scmp.lt.s32.totalorder %s669_s12, 3 }
   0x4   : > { %p138_p2 = pnand %p595_p0, %p137_p1 }
   0x5   : > { %p161_p3 = scmp.lt.s32.totalorder (!%p138_p2), %s591_s13, 1  ;;  %s671_s18 = smov (!%p138_p2), 127  }
   0x6   : > { %141 = sbr.rel (%p138_p2) target bundleno = 329 (0x149), region = 32  ;;  %s672_s19 = smov (!%p138_p2), 122  }
   0x7   : > { %s673_s20 = smov (!%p138_p2), 126   ;;  %s674_s23 = smov (!%p138_p2), 121  }
   0x8   : > { %s675_s24 = smov (!%p138_p2), 120   ;;  %s676_s25 = smov (!%p138_p2), 116  }
   0x9   : > { %s677_s26 = smov (!%p138_p2), 115   ;;  %s678_s27 = smov (!%p138_p2), 114  }
   0xb   : > { %s803_s13 = smov (!%p161_p3, %s591_s13), 1  ;;  %v174_v1 = vld [vmem:[%s799_s1] sm:$0xf]  ;;  %vm185_vm0 = vcmask 130048   ;;  %v600_v5 = vld [vmem:[%s799_s1 + $0x4] sm:$0xf] }
   0xc   : > { %s640_s14 = sshll.u32 %s803_s13, 3  ;;  %v607_v6 = vld [vmem:[%s799_s1 + $0x8] sm:$0xf]  ;;  %v611_v7 = vld [vmem:[%s799_s1 + $0x10] sm:$0xf]  ;;  %v352_v12 = vld [vmem:[%s800_s2] sm:$0xff] }
   0xd   : > { %s165_s17 = scalar_lea.vmem %s798_s0, %s640_s14  ;;  %v609_v11 = vld [vmem:[%s799_s1 + $0xc] sm:$0xf]  ;;  %v679_v13 = vmov 0   ;;  %v612_v15 = vld [vmem:[%s799_s1 + $0x14] sm:$0xf]  ;;  %s641_s8 = sshll.u32 %s803_s13, 5 }
   0xe   : > { %v642_v0 = vld [vmem:[%s165_s17] sm:$0xff]  ;;  %661 = vset.pattern.permute.xlu0 %v679_v13  ;;  %660 = vset.pattern.permute.xlu2 %v679_v13  ;;  %v615_v16 = vld [vmem:[%s799_s1 + $0x18] sm:$0xf]  ;;  %v617_v18 = vld [vmem:[%s799_s1 + $0x1c] sm:$0xf]  ;;  %s785_s11 = scalar_lea.vmem %s801_s3, %s641_s8  ;;  %vm270_vm1 = vcmask 195584  }
   0xf   : > { %182 = vrot.lane.b32.xlu1 %v642_v0, %s671_s18  ;;  %221 = vrot.lane.b32.xlu0 %v642_v0, %s672_s19  ;;  %v620_v17 = vld [vmem:[%s799_s1 + $0x20] sm:$0xf]  ;;  %v624_v20 = vld [vmem:[%s799_s1 + $0x28] sm:$0xf] }
  0x10   : > { %276 = vrot.lane.b32.xlu2 %v642_v0, %s673_s20  ;;  %213 = vmatpush.bf16.msra.mxu1 %v642_v0  ;;  %v621_v21 = vld [vmem:[%s799_s1 + $0x24] sm:$0xf]  ;;  %v629_v22 = vld [vmem:[%s799_s1 + $0x30] sm:$0xf]  ;;  %v626_v23 = vld [vmem:[%s799_s1 + $0x2c] sm:$0xf] }
  0x11   : > { %662 = vset.pattern.permute.xlu1 %v679_v13  ;;  %v633_v24 = vld [vmem:[%s799_s1 + $0x38] sm:$0xf]  ;;  %v630_v25 = vld [vmem:[%s799_s1 + $0x34] sm:$0xf]  ;;  %v635_v26 = vld [vmem:[%s799_s1 + $0x3c] sm:$0xf] }
  0x13   : > { %606 = vmatmul.msk.bf16.vlgmr.msra.gmra.mxu1 %vm185_vm0, %v174_v1 }
  0x17   : > { %243 = vrot.lane.b32.xlu0 %v642_v0, %s674_s23  ;;  %332 = vrot.lane.b32.xlu1 %v642_v0, %s675_s24 }
  0x18   : > { %399 = vrot.lane.b32.xlu2 %v642_v0, %s676_s25 }
  0x1f   : > { %421 = vrot.lane.b32.xlu0 %v642_v0, %s677_s26  ;;  %507 = vrot.lane.b32.xlu1 %v642_v0, %s678_s27 }
  0x20   : > { %266 = vperm.xlu2 %660, %v352_v12  }
  0x27   : > { %355 = vperm.xlu0 %661, %v352_v12   ;;  %444 = vperm.xlu1 %662, %v352_v12  }
  0x28   : > { %530 = vperm.xlu2 %660, %v352_v12  }
  0x6a   : > { %v277_v2 = vpop.permute.xlu2 %276 }
  0x72   : > { %v400_v8 = vpop.permute.xlu2 %399 }
  0x7a   : > { %v267_v36 = vpop.permute.xlu2 %266 }
  0x81   : > { %v183_v3 = vpop.permute.xlu1 %182  ;;  %v222_v4 = vpop.permute.xlu0 %221 }
  0x82   : > { %196 = vmatpush.bf16.msra.mxu0 %v183_v3  ;;  %234 = vmatpush.bf16.msra.mxu2 %v222_v4  ;;  %v531_v12 = vpop.permute.xlu2 %530 }
  0x83   : > { %305 = vmatpush.bf16.msrb.mxu1 %v183_v3 }
  0x85   : > { %605 = vmatmul.msk.bf16.vlgmr.msra.gmra.mxu0 %vm185_vm0, %v600_v5  ;;  %608 = vmatmul.msk.bf16.vlgmr.msra.gmra.mxu2 %vm185_vm0, %v607_v6 }
  0x86   : > { %289 = vmatpush.bf16.msrb.mxu0 %v277_v2  ;;  %614 = vmatmul.msk.bf16.vlgmr.msrb.gmra.mxu1 %vm185_vm0, %v611_v7 }
  0x87   : > { %391 = vmatpush.bf16.msra.mxu1 %v222_v4 }
  0x89   : > { %v244_v9 = vpop.permute.xlu0 %243  ;;  %v333_v10 = vpop.permute.xlu1 %332 }
  0x8a   : > { %256 = vmatpush.bf16.msra.mxu3 %v244_v9  ;;  %323 = vmatpush.bf16.msrb.mxu2 %v244_v9 }
  0x8b   : > { %375 = vmatpush.bf16.msra.mxu0 %v244_v9  ;;  %480 = vmatpush.bf16.msrb.mxu1 %v244_v9 }
  0x8d   : > { %610 = vmatmul.msk.bf16.vlgmr.msra.gmra.mxu3 %vm185_vm0, %v609_v11 }
  0x8e   : > { %345 = vmatpush.bf16.msrb.mxu3 %v333_v10  ;;  %412 = vmatpush.bf16.msra.mxu2 %v400_v8 }
  0x90   : > { %v215_v27 = vpop.f32.mrf.mxu1 }
  0x91   : > { %v422_v14 = vpop.permute.xlu0 %421  ;;  %v508_v19 = vpop.permute.xlu1 %507 }
  0x92   : > { %434 = vmatpush.bf16.msra.mxu3 %v422_v14 }
  0x95   : > { %613 = vmatmul.msk.bf16.vlgmr.msrb.gmra.mxu0 %vm185_vm0, %v612_v15  ;;  %616 = vmatmul.msk.bf16.vlgmr.msrb.gmra.mxu2 %vm185_vm0, %v615_v16 }
  0x96   : > { %464 = vmatpush.bf16.msrb.mxu0 %v333_v10  ;;  %498 = vmatpush.bf16.msrb.mxu2 %v422_v14 }
  0x97   : > { %623 = vmatmul.msk.bf16.vlgmr.msra.gmra.mxu1 %vm185_vm0, %v620_v17 }
  0x98   : > { %v217_v28 = vpop.f32.mrf.mxu1 }
  0x99   : > { %v356_v49 = vpop.permute.xlu0 %355  ;;  %v445_v62 = vpop.permute.xlu1 %444 }
  0x9d   : > { %618 = vmatmul.msk.bf16.vlgmr.msrb.gmra.mxu3 %vm185_vm0, %v617_v18 }
  0x9e   : > { %520 = vmatpush.bf16.msrb.mxu3 %v508_v19 }
  0xa5   : > { %625 = vmatmul.msk.bf16.vlgmr.msra.gmra.mxu2 %vm185_vm0, %v624_v20  ;;  %622 = vmatmul.msk.bf16.vlgmr.msra.gmra.mxu0 %vm185_vm0, %v621_v21 }
  0xa7   : > { %632 = vmatmul.msk.bf16.vlgmr.msrb.gmra.mxu1 %vm185_vm0, %v629_v22 }
  0xad   : > { %627 = vmatmul.msk.bf16.vlgmr.msra.gmra.mxu3 %vm185_vm0, %v626_v23 }
  0xb5   : > { %634 = vmatmul.msk.bf16.vlgmr.msrb.gmra.mxu2 %vm185_vm0, %v633_v24  ;;  %631 = vmatmul.msk.bf16.vlgmr.msrb.gmra.mxu0 %vm185_vm0, %v630_v25 }
  0xbd   : > { %636 = vmatmul.msk.bf16.vlgmr.msrb.gmra.mxu3 %vm185_vm0, %v635_v26 }
 0x102   : > { %v198_v29 = vpop.f32.mrf.mxu0 }
 0x103   : > { %v307_v30 = vpop.f32.mrf.mxu1  ;;  %v216_v32 = vadd.f32 %v215_v27, %v198_v29 }
 0x108   : > { %v236_v31 = vpop.f32.mrf.mxu2 }
 0x109   : > { %v240_v35 = vadd.f32 %v236_v31, %v216_v32 }
 0x10a   : > { %v200_v33 = vpop.f32.mrf.mxu0 }
 0x10b   : > { %v309_v34 = vpop.f32.mrf.mxu1 }
 0x110   : > { %v238_v37 = vpop.f32.mrf.mxu2  ;;  %v258_v38 = vpop.f32.mrf.mxu3 }
 0x111   : > { %v262_v39 = vadd.f32 %v258_v38, %v240_v35 }
 0x112   : > { %v291_v40 = vpop.f32.mrf.mxu0 }
 0x113   : > { %v269_v41 = vadd.f32 %v267_v36, %v262_v39  ;;  %v308_v45 = vadd.f32 %v307_v30, %v291_v40 }
 0x114   : > { %v393_v42 = vpop.f32.mrf.mxu1 }
 0x115   : > { %271 = vst.msk [vmem:[%s785_s11] sm:$0xff] %vm270_vm1, %v269_v41 }
 0x118   : > { %v260_v43 = vpop.f32.mrf.mxu3  ;;  %v325_v44 = vpop.f32.mrf.mxu2 }
 0x119   : > { %v329_v48 = vadd.f32 %v325_v44, %v308_v45 }
 0x11a   : > { %v293_v46 = vpop.f32.mrf.mxu0 }
 0x11c   : > { %v395_v47 = vpop.f32.mrf.mxu1 }
 0x120   : > { %v327_v50 = vpop.f32.mrf.mxu2  ;;  %v347_v51 = vpop.f32.mrf.mxu3 }
 0x121   : > { %v351_v52 = vadd.f32 %v347_v51, %v329_v48 }
 0x122   : > { %v377_v53 = vpop.f32.mrf.mxu0 }
 0x123   : > { %v358_v54 = vadd.f32 %v356_v49, %v351_v52  ;;  %v394_v58 = vadd.f32 %v393_v42, %v377_v53 }
 0x124   : > { %v482_v55 = vpop.f32.mrf.mxu1 }
 0x125   : > { %619 = vst.msk [vmem:[%s785_s11 + $0x8] sm:$0xff] %vm270_vm1, %v358_v54 }
 0x128   : > { %v349_v56 = vpop.f32.mrf.mxu3  ;;  %v414_v57 = vpop.f32.mrf.mxu2 }
 0x129   : > { %v418_v61 = vadd.f32 %v414_v57, %v394_v58 }
 0x12a   : > { %v379_v59 = vpop.f32.mrf.mxu0 }
 0x12c   : > { %v484_v60 = vpop.f32.mrf.mxu1 }
 0x130   : > { %v416_v63 = vpop.f32.mrf.mxu2  ;;  %v436_v0 = vpop.f32.mrf.mxu3 }
 0x131   : > { %v440_v1 = vadd.f32 %v436_v0, %v418_v61 }
 0x132   : > { %v466_v2 = vpop.f32.mrf.mxu0 }
 0x133   : > { %v447_v3 = vadd.f32 %v445_v62, %v440_v1  ;;  %v483_v6 = vadd.f32 %v482_v55, %v466_v2 }
 0x135   : > { %628 = vst.msk [vmem:[%s785_s11 + $0x10] sm:$0xff] %vm270_vm1, %v447_v3 }
 0x138   : > { %v438_v4 = vpop.f32.mrf.mxu3  ;;  %v500_v5 = vpop.f32.mrf.mxu2 }
 0x139   : > { %v504_v8 = vadd.f32 %v500_v5, %v483_v6 }
 0x13a   : > { %v468_v7 = vpop.f32.mrf.mxu0 }
 0x140   : > { %v502_v9 = vpop.f32.mrf.mxu2  ;;  %v522_v10 = vpop.f32.mrf.mxu3 }
 0x141   : > { %v526_v11 = vadd.f32 %v522_v10, %v504_v8 }
 0x143   : > { %v533_v13 = vadd.f32 %v531_v12, %v526_v11 }
 0x145   : > { %637 = vst.msk [vmem:[%s785_s11 + $0x18] sm:$0xff] %vm270_vm1, %v533_v13 }
 0x148   : > { %v524_v14 = vpop.f32.mrf.mxu3 }
 0x149 PF: > { %s13_s12 = sadd.s32 1, %s669_s12  }
 0x14a   : > { %p10_p4 = scmp.ge.s32.totalorder %s13_s12, 4  }
 0x14c   :  { %12 = sbr.rel (!%p10_p4) target bundleno = 1 (0x1), region = 80 }

// kernel: forward.13
= control target key start
LH: loop header
LB: loop body
LE: loop exit
PB: predicated region body
PF: predicated region fallthrough
CT: control target
= control target key end

     0   :  { %s718_s12 = smov 0   ;;  %s834_s0 = inlined_call_operand.vmem [shape: bf16[2,8,110], index: 0, kind: input, shape index: {}]   ;;  %s835_s1 = inlined_call_operand.vmem [shape: bf16[4,4,3,8], index: 1, kind: input, shape index: {}]   ;;  %s836_s2 = inlined_call_operand.vmem [shape: f32[3,1], index: 2, kind: input, shape index: {}]   ;;  %s837_s3 = inlined_call_operand.vmem [shape: f32[2,4,3,80], index: 3, kind: output, shape index: {}]  }
   0x1 LB: > { %s608_s13 = sadd.s32 4294967295, %s687_s12   ;;  %p612_p0 = scmp.ge.s32.totalorder %s687_s12, 1  ;;  %s687_s12 = sphi %s718_s12, %s13_s12  }
   0x2   : > { %p136_p1 = scmp.lt.s32.totalorder %s687_s12, 3 }
   0x4   : > { %p137_p2 = pnand %p612_p0, %p136_p1 }
   0x5   : > { %p159_p3 = scmp.lt.s32.totalorder (!%p137_p2), %s608_s13, 1  ;;  %s689_s20 = smov (!%p137_p2), 127  }
   0x6   : > { %140 = sbr.rel (%p137_p2) target bundleno = 338 (0x152), region = 32  ;;  %s690_s21 = smov (!%p137_p2), 118  }
   0x7   : > { %s691_s22 = smov (!%p137_p2), 126   ;;  %s692_s23 = smov (!%p137_p2), 117  }
   0x8   : > { %s693_s24 = smov (!%p137_p2), 116   ;;  %s694_s25 = smov (!%p137_p2), 108  }
   0x9   : > { %s695_s26 = smov (!%p137_p2), 107   ;;  %s696_s27 = smov (!%p137_p2), 106  }
   0xb   : > { %s839_s13 = smov (!%p159_p3, %s608_s13), 1  ;;  %vm182_vm0 = vcmask 1043456   ;;  %v170_v4 = vld [vmem:[%s835_s1] sm:$0x3]  ;;  %vm178_vm1 = vcmask 64512   ;;  %v697_v22 = vmov 0  }
   0xc   : > { %s613_s14 = sshll.u32 %s839_s13, 2  ;;  %v616_v11 = vld [vmem:[%s835_s1 + $0x2] sm:$0x3]  ;;  %v619_v12 = vld [vmem:[%s835_s1 + $0x4] sm:$0x3]  ;;  %671 = vset.pattern.permute.xlu0 %v697_v22  ;;  %670 = vset.pattern.permute.xlu2 %v697_v22  ;;  %s652_s16 = sshll.u32 %s839_s13, 4 }
   0xd   : > { %s162_s17 = scalar_lea.vmem %s834_s0, %s613_s14  ;;  %v623_v13 = vld [vmem:[%s835_s1 + $0x8] sm:$0x3]  ;;  %v621_v20 = vld [vmem:[%s835_s1 + $0x6] sm:$0x3]  ;;  %v360_v21 = vld [vmem:[%s836_s2] sm:$0x7]  ;;  %672 = vset.pattern.permute.xlu1 %v697_v22  ;;  %s821_s19 = scalar_lea.vmem %s837_s3, %s652_s16 }
   0xe   : > { %v169_v0 = vld [vmem:[%s162_s17] sm:$0xf]  ;;  %v624_v25 = vld [vmem:[%s835_s1 + $0xa] sm:$0x3]  ;;  %v627_v26 = vld [vmem:[%s835_s1 + $0xc] sm:$0x3] }
   0xf   : > { %v174_v1 = vunpack.c.l.b16 %v169_v0  ;;  %v203_v2 = vsel %vm182_vm0, %v169_v0, 0  ;;  %v632_v27 = vld [vmem:[%s835_s1 + $0x10] sm:$0x3]  ;;  %v266_v28 = vld [vmem:[%s836_s2] sm:$0x7]  ;;  %vm274_vm2 = vcmask 649216  }
  0x10   : > { %212 = vmatpush.bf16.msra.mxu1 %v203_v2  ;;  %v629_v30 = vld [vmem:[%s835_s1 + $0xe] sm:$0x3]  ;;  %v454_v32 = vld [vmem:[%s836_s2] sm:$0x7]  ;;  %v636_v34 = vld [vmem:[%s835_s1 + $0x14] sm:$0x3] }
  0x11   : > { %v175_v3 = vpack.c.b16 %v174_v1, %v174_v1  ;;  %v543_v33 = vld [vmem:[%s836_s2] sm:$0x7]  ;;  %v633_v35 = vld [vmem:[%s835_s1 + $0x12] sm:$0x3]  ;;  %v641_v36 = vld [vmem:[%s835_s1 + $0x18] sm:$0x3] }
  0x12   : > { %v638_v37 = vld [vmem:[%s835_s1 + $0x16] sm:$0x3]  ;;  %v645_v38 = vld [vmem:[%s835_s1 + $0x1c] sm:$0x3]  ;;  %v642_v39 = vld [vmem:[%s835_s1 + $0x1a] sm:$0x3] }
  0x13   : > { %176 = vrot.lane.b32.xlu1 %v175_v3, %s689_s20  ;;  %220 = vrot.lane.b32.xlu0 %v175_v3, %s690_s21  ;;  %v647_v40 = vld [vmem:[%s835_s1 + $0x1e] sm:$0x3] }
  0x14   : > { %280 = vrot.lane.b32.xlu2 %v175_v3, %s691_s22  ;;  %618 = vmatmul.msk.bf16.vlgmr.msra.gmra.mxu1 %vm178_vm1, %v170_v4 }
  0x1b   : > { %244 = vrot.lane.b32.xlu0 %v175_v3, %s692_s23  ;;  %338 = vrot.lane.b32.xlu1 %v175_v3, %s693_s24 }
  0x1c   : > { %408 = vrot.lane.b32.xlu2 %v175_v3, %s694_s25 }
  0x23   : > { %432 = vrot.lane.b32.xlu0 %v175_v3, %s695_s26  ;;  %521 = vrot.lane.b32.xlu1 %v175_v3, %s696_s27 }
  0x24   : > { %269 = vperm.xlu2 %670, %v266_v28  }
  0x2b   : > { %363 = vperm.xlu0 %671, %v360_v21   ;;  %457 = vperm.xlu1 %672, %v454_v32  }
  0x2c   : > { %546 = vperm.xlu2 %670, %v543_v33  }
  0x6e   : > { %v281_v5 = vpop.permute.xlu2 %280 }
  0x6f   : > { %v286_v8 = vsel %vm182_vm0, %v281_v5, 0 }
  0x76   : > { %v409_v14 = vpop.permute.xlu2 %408 }
  0x77   : > { %v414_v19 = vsel %vm182_vm0, %v409_v14, 0 }
  0x7e   : > { %v270_v50 = vpop.permute.xlu2 %269 }
  0x85   : > { %v177_v6 = vpop.permute.xlu1 %176  ;;  %v221_v7 = vpop.permute.xlu0 %220 }
  0x86   : > { %v184_v9 = vsel %vm182_vm0, %v177_v6, 0  ;;  %v226_v10 = vsel %vm182_vm0, %v221_v7, 0 }
  0x87   : > { %193 = vmatpush.bf16.msra.mxu0 %v184_v9  ;;  %235 = vmatpush.bf16.msra.mxu2 %v226_v10 }
  0x88   : > { %311 = vmatpush.bf16.msrb.mxu1 %v184_v9 }
  0x8a   : > { %617 = vmatmul.msk.bf16.vlgmr.msra.gmra.mxu0 %vm178_vm1, %v616_v11  ;;  %620 = vmatmul.msk.bf16.vlgmr.msra.gmra.mxu2 %vm178_vm1, %v619_v12 }
  0x8b   : > { %295 = vmatpush.bf16.msrb.mxu0 %v286_v8  ;;  %626 = vmatmul.msk.bf16.vlgmr.msrb.gmra.mxu1 %vm178_vm1, %v623_v13 }
  0x8c   : > { %400 = vmatpush.bf16.msra.mxu1 %v226_v10 }
  0x8d   : > { %v245_v15 = vpop.permute.xlu0 %244  ;;  %v339_v16 = vpop.permute.xlu1 %338 }
  0x8e   : > { %v250_v17 = vsel %vm182_vm0, %v245_v15, 0  ;;  %v344_v18 = vsel %vm182_vm0, %v339_v16, 0 }
  0x8f   : > { %259 = vmatpush.bf16.msra.mxu3 %v250_v17  ;;  %329 = vmatpush.bf16.msrb.mxu2 %v250_v17 }
  0x90   : > { %384 = vmatpush.bf16.msra.mxu0 %v250_v17  ;;  %494 = vmatpush.bf16.msrb.mxu1 %v250_v17 }
  0x91   : > { %v214_v41 = vpop.f32.mrf.mxu1 }
  0x92   : > { %622 = vmatmul.msk.bf16.vlgmr.msra.gmra.mxu3 %vm178_vm1, %v621_v20 }
  0x93   : > { %353 = vmatpush.bf16.msrb.mxu3 %v344_v18  ;;  %423 = vmatpush.bf16.msra.mxu2 %v414_v19 }
  0x95   : > { %v433_v23 = vpop.permute.xlu0 %432  ;;  %v522_v29 = vpop.permute.xlu1 %521 }
  0x96   : > { %v438_v24 = vsel %vm182_vm0, %v433_v23, 0  ;;  %v527_v31 = vsel %vm182_vm0, %v522_v29, 0  ;;  %v547_v29 = vpop.permute.xlu2 %546 }
  0x97   : > { %447 = vmatpush.bf16.msra.mxu3 %v438_v24 }
  0x99   : > { %v216_v42 = vpop.f32.mrf.mxu1 }
  0x9a   : > { %625 = vmatmul.msk.bf16.vlgmr.msrb.gmra.mxu0 %vm178_vm1, %v624_v25  ;;  %628 = vmatmul.msk.bf16.vlgmr.msrb.gmra.mxu2 %vm178_vm1, %v627_v26 }
  0x9b   : > { %478 = vmatpush.bf16.msrb.mxu0 %v344_v18  ;;  %512 = vmatpush.bf16.msrb.mxu2 %v438_v24 }
  0x9c   : > { %635 = vmatmul.msk.bf16.vlgmr.msra.gmra.mxu1 %vm178_vm1, %v632_v27 }
  0x9d   : > { %v364_v0 = vpop.permute.xlu0 %363  ;;  %v458_v14 = vpop.permute.xlu1 %457 }
  0xa2   : > { %630 = vmatmul.msk.bf16.vlgmr.msrb.gmra.mxu3 %vm178_vm1, %v629_v30 }
  0xa3   : > { %536 = vmatpush.bf16.msrb.mxu3 %v527_v31 }
  0xaa   : > { %637 = vmatmul.msk.bf16.vlgmr.msra.gmra.mxu2 %vm178_vm1, %v636_v34  ;;  %634 = vmatmul.msk.bf16.vlgmr.msra.gmra.mxu0 %vm178_vm1, %v633_v35 }
  0xac   : > { %644 = vmatmul.msk.bf16.vlgmr.msrb.gmra.mxu1 %vm178_vm1, %v641_v36 }
  0xb2   : > { %639 = vmatmul.msk.bf16.vlgmr.msra.gmra.mxu3 %vm178_vm1, %v638_v37 }
  0xba   : > { %646 = vmatmul.msk.bf16.vlgmr.msrb.gmra.mxu2 %vm178_vm1, %v645_v38  ;;  %643 = vmatmul.msk.bf16.vlgmr.msrb.gmra.mxu0 %vm178_vm1, %v642_v39 }
  0xc2   : > { %648 = vmatmul.msk.bf16.vlgmr.msrb.gmra.mxu3 %vm178_vm1, %v647_v40 }
 0x107   : > { %v195_v43 = vpop.f32.mrf.mxu0 }
 0x108   : > { %v313_v44 = vpop.f32.mrf.mxu1  ;;  %v215_v46 = vadd.f32 %v214_v41, %v195_v43 }
 0x10d   : > { %v237_v45 = vpop.f32.mrf.mxu2 }
 0x10e   : > { %v241_v49 = vadd.f32 %v237_v45, %v215_v46 }
 0x10f   : > { %v197_v47 = vpop.f32.mrf.mxu0 }
 0x110   : > { %v315_v48 = vpop.f32.mrf.mxu1 }
 0x115   : > { %v239_v51 = vpop.f32.mrf.mxu2  ;;  %v261_v52 = vpop.f32.mrf.mxu3 }
 0x116   : > { %v265_v53 = vadd.f32 %v261_v52, %v241_v49 }
 0x117   : > { %v297_v54 = vpop.f32.mrf.mxu0 }
 0x118   : > { %v272_v55 = vadd.f32 %v270_v50, %v265_v53  ;;  %v314_v59 = vadd.f32 %v313_v44, %v297_v54 }
 0x119   : > { %v402_v56 = vpop.f32.mrf.mxu1 }
 0x11a   : > { %673 = vtanh.f32 %v272_v55 }
 0x11d   : > { %v263_v57 = vpop.f32.mrf.mxu3  ;;  %v331_v58 = vpop.f32.mrf.mxu2 }
 0x11e   : > { %v335_v63 = vadd.f32 %v331_v58, %v314_v59 }
 0x11f   : > { %v299_v60 = vpop.f32.mrf.mxu0 }
 0x120   : > { %v674_v61 = vpop.eup %673 }
 0x121   : > { %275 = vst.msk [vmem:[%s821_s19] sm:$0x7] %vm274_vm2, %v674_v61  ;;  %v404_v62 = vpop.f32.mrf.mxu1 }
 0x125   : > { %v333_v1 = vpop.f32.mrf.mxu2  ;;  %v355_v2 = vpop.f32.mrf.mxu3 }
 0x126   : > { %v359_v3 = vadd.f32 %v355_v2, %v335_v63 }
 0x127   : > { %v386_v4 = vpop.f32.mrf.mxu0 }
 0x128   : > { %v366_v5 = vadd.f32 %v364_v0, %v359_v3  ;;  %v403_v9 = vadd.f32 %v402_v56, %v386_v4 }
 0x129   : > { %v496_v6 = vpop.f32.mrf.mxu1 }
 0x12a   : > { %675 = vtanh.f32 %v366_v5 }
 0x12d   : > { %v357_v7 = vpop.f32.mrf.mxu3  ;;  %v425_v8 = vpop.f32.mrf.mxu2 }
 0x12e   : > { %v429_v13 = vadd.f32 %v425_v8, %v403_v9 }
 0x12f   : > { %v388_v10 = vpop.f32.mrf.mxu0 }
 0x130   : > { %v676_v11 = vpop.eup %675 }
 0x131   : > { %631 = vst.msk [vmem:[%s821_s19 + $0x4] sm:$0x7] %vm274_vm2, %v676_v11  ;;  %v498_v12 = vpop.f32.mrf.mxu1 }
 0x135   : > { %v427_v15 = vpop.f32.mrf.mxu2  ;;  %v449_v16 = vpop.f32.mrf.mxu3 }
 0x136   : > { %v453_v17 = vadd.f32 %v449_v16, %v429_v13 }
 0x137   : > { %v480_v18 = vpop.f32.mrf.mxu0 }
 0x138   : > { %v460_v19 = vadd.f32 %v458_v14, %v453_v17  ;;  %v497_v22 = vadd.f32 %v496_v6, %v480_v18 }
 0x13a   : > { %677 = vtanh.f32 %v460_v19 }
 0x13d   : > { %v451_v20 = vpop.f32.mrf.mxu3  ;;  %v514_v21 = vpop.f32.mrf.mxu2 }
 0x13e   : > { %v518_v25 = vadd.f32 %v514_v21, %v497_v22 }
 0x13f   : > { %v482_v23 = vpop.f32.mrf.mxu0 }
 0x140   : > { %v678_v24 = vpop.eup %677 }
 0x141   : > { %640 = vst.msk [vmem:[%s821_s19 + $0x8] sm:$0x7] %vm274_vm2, %v678_v24 }
 0x145   : > { %v516_v26 = vpop.f32.mrf.mxu2  ;;  %v538_v27 = vpop.f32.mrf.mxu3 }
 0x146   : > { %v542_v28 = vadd.f32 %v538_v27, %v518_v25 }
 0x148   : > { %v549_v30 = vadd.f32 %v547_v29, %v542_v28 }
 0x14a   : > { %679 = vtanh.f32 %v549_v30 }
 0x14d   : > { %v540_v31 = vpop.f32.mrf.mxu3 }
 0x150   : > { %v680_v32 = vpop.eup %679 }
 0x151   : > { %649 = vst.msk [vmem:[%s821_s19 + $0xc] sm:$0x7] %vm274_vm2, %v680_v32 }
 0x152 PF: > { %s13_s12 = sadd.s32 1, %s687_s12  }
 0x153   : > { %p10_p4 = scmp.ge.s32.totalorder %s13_s12, 4  }
 0x155   :  { %12 = sbr.rel (!%p10_p4) target bundleno = 1 (0x1), region = 80 }

</bundles_post_ra>
